<compile_context>
chip_gen: v6e
topology: v6e:2x2x1
jax: 0.10.0
libtpu: 0.0.40
codegen_flags: <defaults>
</compile_context>

<pallas_src>
import math
import functools

import jax
import jax.numpy as jnp
from jax.experimental import pallas as pl
from jax.experimental.pallas import tpu as pltpu


def mab_kernel(q_ref, k_ref,
               wq_ref, bq_ref, wkv_ref, bkv_ref, wo_ref, bo_ref,
               o_ref,
               *, num_heads, dim_V, batch_tile, seq_q, seq_k, fast_math):
    """One grid step handles `batch_tile` batch elements fused into big matmuls.

    Everything is lane-dense: heads are handled with lane masks instead of
    ds-wide column slices / masked partial stores, and no VMEM scratch is used.
    """
    H = num_heads
    ds = dim_V // H
    cdt = wq_ref.dtype                        # MXU operand dtype (bf16 if fast_math)
    scale = 1.0 / math.sqrt(dim_V)            # torch MAB scales scores by sqrt(dim_V)

    # ---- Input projections: two large MXU matmuls, f32 accumulation.
    q_f32 = jnp.dot(q_ref[...], wq_ref[...],
                    preferred_element_type=jnp.float32) + bq_ref[...]    # (TB*Nq, V)
    kv = jnp.dot(k_ref[...], wkv_ref[...],
                 preferred_element_type=jnp.float32) + bkv_ref[...]      # (TB*Nk, 2V)

    # Fold the 1/sqrt(dim_V) softmax scale into K (K is not reused by the residual).
    k3 = (kv[:, :dim_V] * scale).astype(cdt).reshape(batch_tile, seq_k, dim_V)
    v3 = kv[:, dim_V:].astype(cdt).reshape(batch_tile, seq_k, dim_V)
    q3_f32 = q_f32.reshape(batch_tile, seq_q, dim_V)     # f32, reused by the residual
    q3 = q3_f32.astype(cdt)                              # single cast, shared by all heads

    # Per-head lane masks (head h owns lanes [h*ds, (h+1)*ds)); iota built once.
    lane = jax.lax.broadcasted_iota(jnp.int32, (1, 1, dim_V), 2)

    # Residual + per-head attention accumulated into a full-width f32 value.
    # TODO(synk): for long Nk, add a second "arbitrary" grid axis with flash-style
    # online softmax instead of materializing (Nq, Nk) scores per head.
    acc = q3_f32
    for h in range(H):
        m_h = ((lane >= h * ds) & (lane < (h + 1) * ds)).astype(cdt)     # (1,1,V)
        # Masked full-width contraction == per-head ds-wide contraction (exact:
        # masked lanes contribute exact zeros), but every operand stays lane-dense.
        s = jnp.einsum('bqd,bkd->bqk', q3, k3 * m_h,
                       preferred_element_type=jnp.float32)               # (TB,Nq,Nk)
        s_max = jnp.max(s, axis=-1, keepdims=True)
        e = jnp.exp(s - s_max)
        denom = jnp.sum(e, axis=-1, keepdims=True)
        if fast_math:
            a = e * pl.reciprocal(denom, approx=True)                    # EUP, near-free
        else:
            a = e / denom
        acc = acc + jnp.einsum('bqk,bkd->bqd', a.astype(cdt), v3 * m_h,
                               preferred_element_type=jnp.float32)       # head lanes only

    o = acc.reshape(batch_tile * seq_q, dim_V)                           # (TB*Nq, V) f32
    ff = jnp.dot(o.astype(cdt), wo_ref[...],
                 preferred_element_type=jnp.float32) + bo_ref[...]
    # Single lane-dense store of the whole output block.
    o_ref[...] = (o + jnp.maximum(ff, 0.0)).astype(o_ref.dtype)


def prepare_params(params, *, fast_math=False):
    """One-time parameter packing (call once, outside the forward loop):
    fuses the K/V projection into a single (dim_K, 2*dim_V) matmul and pre-casts
    matmul weights to bf16 for the fast-math path (biases stay f32 because they
    are added to f32 accumulators)."""
    wdt = jnp.bfloat16 if fast_math else jnp.float32
    return dict(
        wq=params["wq"].astype(wdt),
        wkv=jnp.concatenate([params["wk"], params["wv"]], axis=1).astype(wdt),
        wo=params["wo"].astype(wdt),
        bq=params["bq"].astype(jnp.float32),
        bkv=jnp.concatenate([params["bk"], params["bv"]], axis=1).astype(jnp.float32),
        bo=params["bo"].astype(jnp.float32),
    )


def _pick_batch_tile(B, Nq, Nk, per_elem_bytes, weight_bytes, vmem_budget):
    """Batch elements per grid step.

    Target ~512 M-rows per step (measured ~85% of HBM roofline at 512 vs ~63%
    at 256), bounded by an explicit VMEM budget, then capped so the grid has at
    least 2 steps (keeps both v7x TensorCores busy).  Blocks must keep their
    second-minor dims multiples of 8 (or span the full array) and B % TB == 0
    so no padded batch rows flow through the softmax."""
    tb_rows = max(1, 512 // max(Nq, Nk, 1))
    tb_vmem = max(1, int((vmem_budget - weight_bytes) // max(per_elem_bytes, 1)))
    tb = max(1, min(B, tb_rows, tb_vmem))
    if B >= 2:
        tb = min(tb, pl.cdiv(B, 2))          # >= 2 grid steps -> both v7x TCs busy

    def _ok(t):
        return (t * Nq) % 8 == 0 and (t * Nk) % 8 == 0 and B % t == 0

    while tb > 1 and not _ok(tb):
        tb -= 1
    if not _ok(tb):
        tb = B                               # full-extent block always satisfies tiling
    return tb


def mab_forward(Q, K, params, num_heads, *, fast_math=False, batch_tile=None):
    B, Nq, dim_Q = Q.shape
    _, Nk, dim_K = K.shape

    # Accept either raw torch-style params or the prepared/fused dict.
    p = params if "wkv" in params else prepare_params(params, fast_math=fast_math)
    dim_V = p["wq"].shape[1]
    assert dim_V % num_heads == 0
    cdt = p["wq"].dtype
    fast = cdt == jnp.bfloat16

    # Lane-dense 2-D slabs with batch folded into the matmul M dimension; inputs
    # are cast to the MXU operand dtype in the wrapper (halves DMA bytes on bf16).
    Qf = Q.reshape(B * Nq, dim_Q).astype(cdt)
    Kf = K.reshape(B * Nk, dim_K).astype(cdt)

    # --- Batch-tile selection against an explicit VMEM budget (v7x: 64 MiB/TC).
    in_sz = jnp.dtype(cdt).itemsize
    out_sz = jnp.dtype(Q.dtype).itemsize
    per_elem = (2 * (Nq * dim_Q + Nk * dim_K) * in_sz        # double-buffered in blocks
                + 2 * Nq * dim_V * out_sz                    # double-buffered out block
                + 4 * (5 * Nq * dim_V + 2 * Nk * dim_V + 3 * Nq * Nk))  # f32 temps
    weight_bytes = (in_sz * (dim_Q * dim_V + 2 * dim_K * dim_V + dim_V * dim_V)
                    + 4 * 4 * dim_V)
    VMEM_BUDGET = 40 << 20
    TB = batch_tile if batch_tile is not None else _pick_batch_tile(
        B, Nq, Nk, per_elem, weight_bytes, VMEM_BUDGET)
    TB = max(1, min(TB, B))
    grid = (pl.cdiv(B, TB),)

    kern = functools.partial(
        mab_kernel, num_heads=num_heads, dim_V=dim_V,
        batch_tile=TB, seq_q=Nq, seq_k=Nk, fast_math=fast)

    # Advisory cost estimate for XLA scheduling around the custom call.
    flops = 2 * B * (Nq * dim_Q * dim_V            # Q projection
                     + Nk * dim_K * 2 * dim_V      # fused K/V projection
                     + 2 * Nq * Nk * dim_V         # scores + A@V (all heads)
                     + Nq * dim_V * dim_V)         # output FFN
    transcendentals = B * num_heads * Nq * Nk      # softmax exp
    bytes_accessed = int(Qf.size * in_sz + Kf.size * in_sz
                         + weight_bytes + B * Nq * dim_V * out_sz)
    cost = pl.CostEstimate(flops=flops, transcendentals=transcendentals,
                           bytes_accessed=bytes_accessed)

    out_shape = jax.ShapeDtypeStruct((B * Nq, dim_V), Q.dtype)
    out_spec = pl.BlockSpec((TB * Nq, dim_V), lambda i: (i, 0))
    cparams = pltpu.CompilerParams(dimension_semantics=("parallel",),
                                   vmem_limit_bytes=48 << 20)

    def _in_specs(single_buffer_weights):
        wkw = dict(pipeline_mode=pl.Buffered(1)) if single_buffer_weights else {}
        ws = lambda shape: pl.BlockSpec(shape, lambda i: (0, 0), **wkw)
        return [
            pl.BlockSpec((TB * Nq, dim_Q), lambda i: (i, 0)),   # Q rows (batch tile)
            pl.BlockSpec((TB * Nk, dim_K), lambda i: (i, 0)),   # K rows (batch tile)
            ws((dim_Q, dim_V)),                                 # Wq
            ws((1, dim_V)),                                     # bq
            ws((dim_K, 2 * dim_V)),                             # fused Wk|Wv
            ws((1, 2 * dim_V)),                                 # fused bk|bv
            ws((dim_V, dim_V)),                                 # Wo
            ws((1, dim_V)),                                     # bo
        ]

    def _run(single_buffer_weights):
        return pl.pallas_call(
            kern,
            out_shape=out_shape,
            grid=grid,
            in_specs=_in_specs(single_buffer_weights),
            out_specs=out_spec,
            compiler_params=cparams,
            cost_estimate=cost,
        )(Qf, Kf, p["wq"], p["bq"], p["wkv"], p["bkv"], p["wo"], p["bo"])

    try:
        # Weights never change across grid steps: single-buffer them to save VMEM.
        out_flat = _run(True)
    except Exception:
        # Fallback for JAX versions that reject pipeline_mode=pl.Buffered(1).
        out_flat = _run(False)

    return out_flat.reshape(B, Nq, dim_V)


def mab_reference(Q, K, params, num_heads):
    """Pure-JAX replica of the torch forward (for validation)."""
    dim_V = params["wq"].shape[1]
    q = Q @ params["wq"] + params["bq"]
    k = K @ params["wk"] + params["bk"]
    v = K @ params["wv"] + params["bv"]

    def split_heads(x):   # torch.cat(X.split(ds, 2), 0): (B,N,V) -> (H*B,N,ds)
        return jnp.concatenate(jnp.split(x, num_heads, axis=2), axis=0)

    Q_, K_, V_ = split_heads(q), split_heads(k), split_heads(v)
    A = jax.nn.softmax(jnp.einsum("bqd,bkd->bqk", Q_, K_) / math.sqrt(dim_V), axis=2)
    O = Q_ + jnp.einsum("bqk,bkd->bqd", A, V_)
    O = jnp.concatenate(jnp.split(O, num_heads, axis=0), axis=2)   # back to (B,N,V)
    O = O + jax.nn.relu(O @ params["wo"] + params["bo"])
    return O


def init_params(key, dim_Q, dim_K, dim_V):
    """Deterministic init mimicking torch.nn.Linear defaults."""
    ks = jax.random.split(key, 8)

    def lin(kw, kb, fan_in, fan_out):
        bound = 1.0 / math.sqrt(fan_in)
        w = jax.random.uniform(kw, (fan_in, fan_out), jnp.float32, -bound, bound)
        b = jax.random.uniform(kb, (1, fan_out), jnp.float32, -bound, bound)
        return w, b

    wq, bq = lin(ks[0], ks[1], dim_Q, dim_V)
    wk, bk = lin(ks[2], ks[3], dim_K, dim_V)
    wv, bv = lin(ks[4], ks[5], dim_K, dim_V)
    wo, bo = lin(ks[6], ks[7], dim_V, dim_V)
    return dict(wq=wq, bq=bq, wk=wk, bk=bk, wv=wv, bv=bv, wo=wo, bo=bo)


if __name__ == "__main__":
    # Shapes consistent with MAB(dim_Q=32, dim_K=32, dim_V=32, num_heads=4)
    B, Nq, Nk = 2, 8, 8
    dim_Q, dim_K, dim_V, num_heads = 32, 32, 32, 4

    key = jax.random.PRNGKey(0)
    kq, kk, kp = jax.random.split(key, 3)
    Q = jax.random.normal(kq, (B, Nq, dim_Q), jnp.float32)
    K = jax.random.normal(kk, (B, Nk, dim_K), jnp.float32)
    params = init_params(kp, dim_Q, dim_K, dim_V)

    ref = mab_reference(Q, K, params, num_heads)

    # Fused / pre-cast weights are prepared once, outside the forward call.
    p_f32 = prepare_params(params, fast_math=False)
    p_bf16 = prepare_params(params, fast_math=True)

    # Precise (f32 MXU) path: must match the reference tightly.
    out = jax.block_until_ready(mab_forward(Q, K, p_f32, num_heads))
    assert out.shape == (B, Nq, dim_V)
    assert jnp.allclose(out, ref, atol=1e-4, rtol=1e-4), "f32 path mismatch vs reference"

    # Fast-math path (bf16 MXU operands + approx reciprocal): loose tolerance.
    out_fast = jax.block_until_ready(mab_forward(Q, K, p_bf16, num_heads))
    assert out_fast.shape == (B, Nq, dim_V)
    assert jnp.allclose(out_fast, ref, atol=1.5e-1, rtol=1e-1), "bf16 path mismatch vs reference"

    print("KERNEL_OK")
</pallas_src>

<mosaic_0001>
module attributes {stable_mosaic.version = 11 : i64} {
  func.func @mab_kernel(%arg0: i32, %arg1: memref<8x32xf32, #tpu.memory_space<vmem>>, %arg2: memref<8x32xf32, #tpu.memory_space<vmem>>, %arg3: memref<32x32xf32, #tpu.memory_space<vmem>>, %arg4: memref<1x32xf32, #tpu.memory_space<vmem>>, %arg5: memref<32x64xf32, #tpu.memory_space<vmem>>, %arg6: memref<1x64xf32, #tpu.memory_space<vmem>>, %arg7: memref<32x32xf32, #tpu.memory_space<vmem>>, %arg8: memref<1x32xf32, #tpu.memory_space<vmem>>, %arg9: memref<8x32xf32, #tpu.memory_space<vmem>>) attributes {dimension_semantics = [#tpu.dimension_semantics<parallel>], iteration_bounds = array<i64: 2>, scalar_prefetch = 0 : i64, scratch_operands = 0 : i64, tpu.core_type = #tpu.core_type<tc>, window_params = [{transform_indices = @transform_0, window_bounds = array<i64: 8, 32>}, {transform_indices = @transform_1, window_bounds = array<i64: 8, 32>}, {pipeline_mode = #tpu.pipeline_mode<synchronous>, transform_indices = @transform_2, window_bounds = array<i64: 32, 32>}, {pipeline_mode = #tpu.pipeline_mode<synchronous>, transform_indices = @transform_3, window_bounds = array<i64: 1, 32>}, {pipeline_mode = #tpu.pipeline_mode<synchronous>, transform_indices = @transform_4, window_bounds = array<i64: 32, 64>}, {pipeline_mode = #tpu.pipeline_mode<synchronous>, transform_indices = @transform_5, window_bounds = array<i64: 1, 64>}, {pipeline_mode = #tpu.pipeline_mode<synchronous>, transform_indices = @transform_6, window_bounds = array<i64: 32, 32>}, {pipeline_mode = #tpu.pipeline_mode<synchronous>, transform_indices = @transform_7, window_bounds = array<i64: 1, 32>}, {transform_indices = @transform_8, window_bounds = array<i64: 8, 32>}]} {
    %c0 = arith.constant 0 : index
    %c0_0 = arith.constant 0 : index
    %0 = vector.load %arg1[%c0, %c0_0] : memref<8x32xf32, #tpu.memory_space<vmem>>, vector<8x32xf32>
    %c0_1 = arith.constant 0 : index
    %c0_2 = arith.constant 0 : index
    %1 = vector.load %arg3[%c0_1, %c0_2] : memref<32x32xf32, #tpu.memory_space<vmem>>, vector<32x32xf32>
    %cst = arith.constant dense<0.000000e+00> : vector<8x32xf32>
    %2 = tpu.matmul %0, %1, %cst {dimension_numbers = #tpu.dot_dimension_numbers<[1], [0], [0], [1], [0, 0, 1, 1], [], []>} : vector<8x32xf32>, vector<32x32xf32>, vector<8x32xf32> -> vector<8x32xf32>
    %c0_3 = arith.constant 0 : index
    %c0_4 = arith.constant 0 : index
    %3 = vector.load %arg4[%c0_3, %c0_4] : memref<1x32xf32, #tpu.memory_space<vmem>>, vector<1x32xf32>
    %4 = vector.broadcast %3 : vector<1x32xf32> to vector<8x32xf32>
    %5 = arith.addf %2, %4 : vector<8x32xf32>
    %c0_5 = arith.constant 0 : index
    %c0_6 = arith.constant 0 : index
    %6 = vector.load %arg2[%c0_5, %c0_6] : memref<8x32xf32, #tpu.memory_space<vmem>>, vector<8x32xf32>
    %c0_7 = arith.constant 0 : index
    %c0_8 = arith.constant 0 : index
    %7 = vector.load %arg5[%c0_7, %c0_8] : memref<32x64xf32, #tpu.memory_space<vmem>>, vector<32x64xf32>
    %cst_9 = arith.constant dense<0.000000e+00> : vector<8x64xf32>
    %8 = tpu.matmul %6, %7, %cst_9 {dimension_numbers = #tpu.dot_dimension_numbers<[1], [0], [0], [1], [0, 0, 1, 1], [], []>} : vector<8x32xf32>, vector<32x64xf32>, vector<8x64xf32> -> vector<8x64xf32>
    %c0_10 = arith.constant 0 : index
    %c0_11 = arith.constant 0 : index
    %9 = vector.load %arg6[%c0_10, %c0_11] : memref<1x64xf32, #tpu.memory_space<vmem>>, vector<1x64xf32>
    %10 = vector.broadcast %9 : vector<1x64xf32> to vector<8x64xf32>
    %11 = arith.addf %8, %10 : vector<8x64xf32>
    %12 = vector.extract_strided_slice %11 {offsets = [0, 0], sizes = [8, 32], strides = [1, 1]} : vector<8x64xf32> to vector<8x32xf32>
    %cst_12 = arith.constant 0.176776692 : f32
    %13 = vector.broadcast %cst_12 : f32 to vector<8x32xf32>
    %14 = arith.mulf %12, %13 : vector<8x32xf32>
    %15 = vector.shape_cast %14 : vector<8x32xf32> to vector<1x8x32xf32>
    %16 = vector.extract_strided_slice %11 {offsets = [0, 32], sizes = [8, 32], strides = [1, 1]} : vector<8x64xf32> to vector<8x32xf32>
    %17 = vector.shape_cast %16 : vector<8x32xf32> to vector<1x8x32xf32>
    %18 = vector.shape_cast %5 : vector<8x32xf32> to vector<1x8x32xf32>
    %19 = tpu.iota {dimensions = array<i32: 2>} : vector<1x1x32xi32>
    %c0_i32 = arith.constant 0 : i32
    %20 = vector.broadcast %c0_i32 : i32 to vector<1x1x32xi32>
    %21 = arith.cmpi sge, %19, %20 : vector<1x1x32xi32>
    %c8_i32 = arith.constant 8 : i32
    %22 = vector.broadcast %c8_i32 : i32 to vector<1x1x32xi32>
    %23 = arith.cmpi slt, %19, %22 : vector<1x1x32xi32>
    %24 = arith.andi %21, %23 : vector<1x1x32xi1>
    %25 = arith.extui %24 : vector<1x1x32xi1> to vector<1x1x32xi32>
    %26 = arith.sitofp %25 : vector<1x1x32xi32> to vector<1x1x32xf32>
    %27 = vector.broadcast %26 : vector<1x1x32xf32> to vector<1x8x32xf32>
    %28 = arith.mulf %15, %27 : vector<1x8x32xf32>
    "tpu.trace_start"() <{level = 10 : i32, message = "bqd,bkd->bqk"}> : () -> ()
    %cst_13 = arith.constant dense<0.000000e+00> : vector<1x8x8xf32>
    %29 = tpu.matmul %18, %28, %cst_13 {dimension_numbers = #tpu.dot_dimension_numbers<[2], [2], [1], [1], [0, 0, 0, 1, 1, 1], [0], [0]>} : vector<1x8x32xf32>, vector<1x8x32xf32>, vector<1x8x8xf32> -> vector<1x8x8xf32>
    "tpu.trace_stop"() : () -> ()
    %cst_14 = arith.constant dense<0xFF800000> : vector<1x8xf32>
    %30 = vector.multi_reduction <maximumf>, %29, %cst_14 [2] : vector<1x8x8xf32> to vector<1x8xf32>
    %31 = vector.shape_cast %30 : vector<1x8xf32> to vector<1x8x1xf32>
    %32 = vector.broadcast %31 : vector<1x8x1xf32> to vector<1x8x8xf32>
    %33 = arith.subf %29, %32 : vector<1x8x8xf32>
    %34 = math.exp %33 : vector<1x8x8xf32>
    %cst_15 = arith.constant dense<0.000000e+00> : vector<1x8xf32>
    %35 = vector.multi_reduction <add>, %34, %cst_15 [2] : vector<1x8x8xf32> to vector<1x8xf32>
    %36 = vector.shape_cast %35 : vector<1x8xf32> to vector<1x8x1xf32>
    %37 = vector.broadcast %36 : vector<1x8x1xf32> to vector<1x8x8xf32>
    %38 = arith.divf %34, %37 : vector<1x8x8xf32>
    %39 = vector.broadcast %26 : vector<1x1x32xf32> to vector<1x8x32xf32>
    %40 = arith.mulf %17, %39 : vector<1x8x32xf32>
    "tpu.trace_start"() <{level = 10 : i32, message = "bqk,bkd->bqd"}> : () -> ()
    %cst_16 = arith.constant dense<0.000000e+00> : vector<1x8x32xf32>
    %41 = tpu.matmul %38, %40, %cst_16 {dimension_numbers = #tpu.dot_dimension_numbers<[2], [1], [1], [2], [0, 0, 0, 1, 1, 2], [0], [0]>} : vector<1x8x8xf32>, vector<1x8x32xf32>, vector<1x8x32xf32> -> vector<1x8x32xf32>
    "tpu.trace_stop"() : () -> ()
    %42 = arith.addf %18, %41 : vector<1x8x32xf32>
    %c8_i32_17 = arith.constant 8 : i32
    %43 = vector.broadcast %c8_i32_17 : i32 to vector<1x1x32xi32>
    %44 = arith.cmpi sge, %19, %43 : vector<1x1x32xi32>
    %c16_i32 = arith.constant 16 : i32
    %45 = vector.broadcast %c16_i32 : i32 to vector<1x1x32xi32>
    %46 = arith.cmpi slt, %19, %45 : vector<1x1x32xi32>
    %47 = arith.andi %44, %46 : vector<1x1x32xi1>
    %48 = arith.extui %47 : vector<1x1x32xi1> to vector<1x1x32xi32>
    %49 = arith.sitofp %48 : vector<1x1x32xi32> to vector<1x1x32xf32>
    %50 = vector.broadcast %49 : vector<1x1x32xf32> to vector<1x8x32xf32>
    %51 = arith.mulf %15, %50 : vector<1x8x32xf32>
    "tpu.trace_start"() <{level = 10 : i32, message = "bqd,bkd->bqk"}> : () -> ()
    %cst_18 = arith.constant dense<0.000000e+00> : vector<1x8x8xf32>
    %52 = tpu.matmul %18, %51, %cst_18 {dimension_numbers = #tpu.dot_dimension_numbers<[2], [2], [1], [1], [0, 0, 0, 1, 1, 1], [0], [0]>} : vector<1x8x32xf32>, vector<1x8x32xf32>, vector<1x8x8xf32> -> vector<1x8x8xf32>
    "tpu.trace_stop"() : () -> ()
    %cst_19 = arith.constant dense<0xFF800000> : vector<1x8xf32>
    %53 = vector.multi_reduction <maximumf>, %52, %cst_19 [2] : vector<1x8x8xf32> to vector<1x8xf32>
    %54 = vector.shape_cast %53 : vector<1x8xf32> to vector<1x8x1xf32>
    %55 = vector.broadcast %54 : vector<1x8x1xf32> to vector<1x8x8xf32>
    %56 = arith.subf %52, %55 : vector<1x8x8xf32>
    %57 = math.exp %56 : vector<1x8x8xf32>
    %cst_20 = arith.constant dense<0.000000e+00> : vector<1x8xf32>
    %58 = vector.multi_reduction <add>, %57, %cst_20 [2] : vector<1x8x8xf32> to vector<1x8xf32>
    %59 = vector.shape_cast %58 : vector<1x8xf32> to vector<1x8x1xf32>
    %60 = vector.broadcast %59 : vector<1x8x1xf32> to vector<1x8x8xf32>
    %61 = arith.divf %57, %60 : vector<1x8x8xf32>
    %62 = vector.broadcast %49 : vector<1x1x32xf32> to vector<1x8x32xf32>
    %63 = arith.mulf %17, %62 : vector<1x8x32xf32>
    "tpu.trace_start"() <{level = 10 : i32, message = "bqk,bkd->bqd"}> : () -> ()
    %cst_21 = arith.constant dense<0.000000e+00> : vector<1x8x32xf32>
    %64 = tpu.matmul %61, %63, %cst_21 {dimension_numbers = #tpu.dot_dimension_numbers<[2], [1], [1], [2], [0, 0, 0, 1, 1, 2], [0], [0]>} : vector<1x8x8xf32>, vector<1x8x32xf32>, vector<1x8x32xf32> -> vector<1x8x32xf32>
    "tpu.trace_stop"() : () -> ()
    %65 = arith.addf %42, %64 : vector<1x8x32xf32>
    %c16_i32_22 = arith.constant 16 : i32
    %66 = vector.broadcast %c16_i32_22 : i32 to vector<1x1x32xi32>
    %67 = arith.cmpi sge, %19, %66 : vector<1x1x32xi32>
    %c24_i32 = arith.constant 24 : i32
    %68 = vector.broadcast %c24_i32 : i32 to vector<1x1x32xi32>
    %69 = arith.cmpi slt, %19, %68 : vector<1x1x32xi32>
    %70 = arith.andi %67, %69 : vector<1x1x32xi1>
    %71 = arith.extui %70 : vector<1x1x32xi1> to vector<1x1x32xi32>
    %72 = arith.sitofp %71 : vector<1x1x32xi32> to vector<1x1x32xf32>
    %73 = vector.broadcast %72 : vector<1x1x32xf32> to vector<1x8x32xf32>
    %74 = arith.mulf %15, %73 : vector<1x8x32xf32>
    "tpu.trace_start"() <{level = 10 : i32, message = "bqd,bkd->bqk"}> : () -> ()
    %cst_23 = arith.constant dense<0.000000e+00> : vector<1x8x8xf32>
    %75 = tpu.matmul %18, %74, %cst_23 {dimension_numbers = #tpu.dot_dimension_numbers<[2], [2], [1], [1], [0, 0, 0, 1, 1, 1], [0], [0]>} : vector<1x8x32xf32>, vector<1x8x32xf32>, vector<1x8x8xf32> -> vector<1x8x8xf32>
    "tpu.trace_stop"() : () -> ()
    %cst_24 = arith.constant dense<0xFF800000> : vector<1x8xf32>
    %76 = vector.multi_reduction <maximumf>, %75, %cst_24 [2] : vector<1x8x8xf32> to vector<1x8xf32>
    %77 = vector.shape_cast %76 : vector<1x8xf32> to vector<1x8x1xf32>
    %78 = vector.broadcast %77 : vector<1x8x1xf32> to vector<1x8x8xf32>
    %79 = arith.subf %75, %78 : vector<1x8x8xf32>
    %80 = math.exp %79 : vector<1x8x8xf32>
    %cst_25 = arith.constant dense<0.000000e+00> : vector<1x8xf32>
    %81 = vector.multi_reduction <add>, %80, %cst_25 [2] : vector<1x8x8xf32> to vector<1x8xf32>
    %82 = vector.shape_cast %81 : vector<1x8xf32> to vector<1x8x1xf32>
    %83 = vector.broadcast %82 : vector<1x8x1xf32> to vector<1x8x8xf32>
    %84 = arith.divf %80, %83 : vector<1x8x8xf32>
    %85 = vector.broadcast %72 : vector<1x1x32xf32> to vector<1x8x32xf32>
    %86 = arith.mulf %17, %85 : vector<1x8x32xf32>
    "tpu.trace_start"() <{level = 10 : i32, message = "bqk,bkd->bqd"}> : () -> ()
    %cst_26 = arith.constant dense<0.000000e+00> : vector<1x8x32xf32>
    %87 = tpu.matmul %84, %86, %cst_26 {dimension_numbers = #tpu.dot_dimension_numbers<[2], [1], [1], [2], [0, 0, 0, 1, 1, 2], [0], [0]>} : vector<1x8x8xf32>, vector<1x8x32xf32>, vector<1x8x32xf32> -> vector<1x8x32xf32>
    "tpu.trace_stop"() : () -> ()
    %88 = arith.addf %65, %87 : vector<1x8x32xf32>
    %c24_i32_27 = arith.constant 24 : i32
    %89 = vector.broadcast %c24_i32_27 : i32 to vector<1x1x32xi32>
    %90 = arith.cmpi sge, %19, %89 : vector<1x1x32xi32>
    %c32_i32 = arith.constant 32 : i32
    %91 = vector.broadcast %c32_i32 : i32 to vector<1x1x32xi32>
    %92 = arith.cmpi slt, %19, %91 : vector<1x1x32xi32>
    %93 = arith.andi %90, %92 : vector<1x1x32xi1>
    %94 = arith.extui %93 : vector<1x1x32xi1> to vector<1x1x32xi32>
    %95 = arith.sitofp %94 : vector<1x1x32xi32> to vector<1x1x32xf32>
    %96 = vector.broadcast %95 : vector<1x1x32xf32> to vector<1x8x32xf32>
    %97 = arith.mulf %15, %96 : vector<1x8x32xf32>
    "tpu.trace_start"() <{level = 10 : i32, message = "bqd,bkd->bqk"}> : () -> ()
    %cst_28 = arith.constant dense<0.000000e+00> : vector<1x8x8xf32>
    %98 = tpu.matmul %18, %97, %cst_28 {dimension_numbers = #tpu.dot_dimension_numbers<[2], [2], [1], [1], [0, 0, 0, 1, 1, 1], [0], [0]>} : vector<1x8x32xf32>, vector<1x8x32xf32>, vector<1x8x8xf32> -> vector<1x8x8xf32>
    "tpu.trace_stop"() : () -> ()
    %cst_29 = arith.constant dense<0xFF800000> : vector<1x8xf32>
    %99 = vector.multi_reduction <maximumf>, %98, %cst_29 [2] : vector<1x8x8xf32> to vector<1x8xf32>
    %100 = vector.shape_cast %99 : vector<1x8xf32> to vector<1x8x1xf32>
    %101 = vector.broadcast %100 : vector<1x8x1xf32> to vector<1x8x8xf32>
    %102 = arith.subf %98, %101 : vector<1x8x8xf32>
    %103 = math.exp %102 : vector<1x8x8xf32>
    %cst_30 = arith.constant dense<0.000000e+00> : vector<1x8xf32>
    %104 = vector.multi_reduction <add>, %103, %cst_30 [2] : vector<1x8x8xf32> to vector<1x8xf32>
    %105 = vector.shape_cast %104 : vector<1x8xf32> to vector<1x8x1xf32>
    %106 = vector.broadcast %105 : vector<1x8x1xf32> to vector<1x8x8xf32>
    %107 = arith.divf %103, %106 : vector<1x8x8xf32>
    %108 = vector.broadcast %95 : vector<1x1x32xf32> to vector<1x8x32xf32>
    %109 = arith.mulf %17, %108 : vector<1x8x32xf32>
    "tpu.trace_start"() <{level = 10 : i32, message = "bqk,bkd->bqd"}> : () -> ()
    %cst_31 = arith.constant dense<0.000000e+00> : vector<1x8x32xf32>
    %110 = tpu.matmul %107, %109, %cst_31 {dimension_numbers = #tpu.dot_dimension_numbers<[2], [1], [1], [2], [0, 0, 0, 1, 1, 2], [0], [0]>} : vector<1x8x8xf32>, vector<1x8x32xf32>, vector<1x8x32xf32> -> vector<1x8x32xf32>
    "tpu.trace_stop"() : () -> ()
    %111 = arith.addf %88, %110 : vector<1x8x32xf32>
    %112 = vector.shape_cast %111 : vector<1x8x32xf32> to vector<8x32xf32>
    %c0_32 = arith.constant 0 : index
    %c0_33 = arith.constant 0 : index
    %113 = vector.load %arg7[%c0_32, %c0_33] : memref<32x32xf32, #tpu.memory_space<vmem>>, vector<32x32xf32>
    %cst_34 = arith.constant dense<0.000000e+00> : vector<8x32xf32>
    %114 = tpu.matmul %112, %113, %cst_34 {dimension_numbers = #tpu.dot_dimension_numbers<[1], [0], [0], [1], [0, 0, 1, 1], [], []>} : vector<8x32xf32>, vector<32x32xf32>, vector<8x32xf32> -> vector<8x32xf32>
    %c0_35 = arith.constant 0 : index
    %c0_36 = arith.constant 0 : index
    %115 = vector.load %arg8[%c0_35, %c0_36] : memref<1x32xf32, #tpu.memory_space<vmem>>, vector<1x32xf32>
    %116 = vector.broadcast %115 : vector<1x32xf32> to vector<8x32xf32>
    %117 = arith.addf %114, %116 : vector<8x32xf32>
    %cst_37 = arith.constant 0.000000e+00 : f32
    %118 = vector.broadcast %cst_37 : f32 to vector<8x32xf32>
    %119 = arith.maximumf %117, %118 : vector<8x32xf32>
    %120 = arith.addf %112, %119 : vector<8x32xf32>
    %c0_38 = arith.constant 0 : index
    %c0_39 = arith.constant 0 : index
    %121 = vector.load %arg9[%c0_38, %c0_39] : memref<8x32xf32, #tpu.memory_space<vmem>>, vector<8x32xf32>
    tpu.vector_store %arg9[%c0_38, %c0_39], %120 {strides = array<i32>} : memref<8x32xf32, #tpu.memory_space<vmem>>, vector<8x32xf32>,
    return
  }
  func.func @transform_0(%arg0: i32) -> (i32, i32) {
    %c0_i32 = arith.constant 0 : i32
    %c0_i32_0 = arith.constant 0 : i32
    return %arg0, %c0_i32 : i32, i32
  }
  func.func @transform_1(%arg0: i32) -> (i32, i32) {
    %c0_i32 = arith.constant 0 : i32
    %c0_i32_0 = arith.constant 0 : i32
    return %arg0, %c0_i32 : i32, i32
  }
  func.func @transform_2(%arg0: i32) -> (i32, i32) {
    %c0_i32 = arith.constant 0 : i32
    %c0_i32_0 = arith.constant 0 : i32
    %c0_i32_1 = arith.constant 0 : i32
    return %c0_i32, %c0_i32_0 : i32, i32
  }
  func.func @transform_3(%arg0: i32) -> (i32, i32) {
    %c0_i32 = arith.constant 0 : i32
    %c0_i32_0 = arith.constant 0 : i32
    %c0_i32_1 = arith.constant 0 : i32
    return %c0_i32, %c0_i32_0 : i32, i32
  }
  func.func @transform_4(%arg0: i32) -> (i32, i32) {
    %c0_i32 = arith.constant 0 : i32
    %c0_i32_0 = arith.constant 0 : i32
    %c0_i32_1 = arith.constant 0 : i32
    return %c0_i32, %c0_i32_0 : i32, i32
  }
  func.func @transform_5(%arg0: i32) -> (i32, i32) {
    %c0_i32 = arith.constant 0 : i32
    %c0_i32_0 = arith.constant 0 : i32
    %c0_i32_1 = arith.constant 0 : i32
    return %c0_i32, %c0_i32_0 : i32, i32
  }
  func.func @transform_6(%arg0: i32) -> (i32, i32) {
    %c0_i32 = arith.constant 0 : i32
    %c0_i32_0 = arith.constant 0 : i32
    %c0_i32_1 = arith.constant 0 : i32
    return %c0_i32, %c0_i32_0 : i32, i32
  }
  func.func @transform_7(%arg0: i32) -> (i32, i32) {
    %c0_i32 = arith.constant 0 : i32
    %c0_i32_0 = arith.constant 0 : i32
    %c0_i32_1 = arith.constant 0 : i32
    return %c0_i32, %c0_i32_0 : i32, i32
  }
  func.func @transform_8(%arg0: i32) -> (i32, i32) {
    %c0_i32 = arith.constant 0 : i32
    %c0_i32_0 = arith.constant 0 : i32
    return %arg0, %c0_i32 : i32, i32
  }
}

module attributes {stable_mosaic.version = 11 : i64} {
  func.func @mab_kernel(%arg0: i32, %arg1: memref<8x32xf32, #tpu.memory_space<vmem>>, %arg2: memref<8x32xf32, #tpu.memory_space<vmem>>, %arg3: memref<32x32xf32, #tpu.memory_space<vmem>>, %arg4: memref<1x32xf32, #tpu.memory_space<vmem>>, %arg5: memref<32x64xf32, #tpu.memory_space<vmem>>, %arg6: memref<1x64xf32, #tpu.memory_space<vmem>>, %arg7: memref<32x32xf32, #tpu.memory_space<vmem>>, %arg8: memref<1x32xf32, #tpu.memory_space<vmem>>, %arg9: memref<8x32xf32, #tpu.memory_space<vmem>>) attributes {dimension_semantics = [#tpu.dimension_semantics<parallel>], iteration_bounds = array<i64: 2>, scalar_prefetch = 0 : i64, scratch_operands = 0 : i64, tpu.core_type = #tpu.core_type<tc>, window_params = [{transform_indices = @transform_0, window_bounds = array<i64: 8, 32>}, {transform_indices = @transform_1, window_bounds = array<i64: 8, 32>}, {pipeline_mode = #tpu.pipeline_mode<synchronous>, transform_indices = @transform_2, window_bounds = array<i64: 32, 32>}, {pipeline_mode = #tpu.pipeline_mode<synchronous>, transform_indices = @transform_3, window_bounds = array<i64: 1, 32>}, {pipeline_mode = #tpu.pipeline_mode<synchronous>, transform_indices = @transform_4, window_bounds = array<i64: 32, 64>}, {pipeline_mode = #tpu.pipeline_mode<synchronous>, transform_indices = @transform_5, window_bounds = array<i64: 1, 64>}, {pipeline_mode = #tpu.pipeline_mode<synchronous>, transform_indices = @transform_6, window_bounds = array<i64: 32, 32>}, {pipeline_mode = #tpu.pipeline_mode<synchronous>, transform_indices = @transform_7, window_bounds = array<i64: 1, 32>}, {transform_indices = @transform_8, window_bounds = array<i64: 8, 32>}]} {
    %c0 = arith.constant 0 : index
    %c0_0 = arith.constant 0 : index
    %0 = vector.load %arg1[%c0, %c0_0] : memref<8x32xf32, #tpu.memory_space<vmem>>, vector<8x32xf32>
    %c0_1 = arith.constant 0 : index
    %c0_2 = arith.constant 0 : index
    %1 = vector.load %arg3[%c0_1, %c0_2] : memref<32x32xf32, #tpu.memory_space<vmem>>, vector<32x32xf32>
    %cst = arith.constant dense<0.000000e+00> : vector<8x32xf32>
    %2 = tpu.matmul %0, %1, %cst {dimension_numbers = #tpu.dot_dimension_numbers<[1], [0], [0], [1], [0, 0, 1, 1], [], []>} : vector<8x32xf32>, vector<32x32xf32>, vector<8x32xf32> -> vector<8x32xf32>
    %c0_3 = arith.constant 0 : index
    %c0_4 = arith.constant 0 : index
    %3 = vector.load %arg4[%c0_3, %c0_4] : memref<1x32xf32, #tpu.memory_space<vmem>>, vector<1x32xf32>
    %4 = vector.broadcast %3 : vector<1x32xf32> to vector<8x32xf32>
    %5 = arith.addf %2, %4 : vector<8x32xf32>
    %c0_5 = arith.constant 0 : index
    %c0_6 = arith.constant 0 : index
    %6 = vector.load %arg2[%c0_5, %c0_6] : memref<8x32xf32, #tpu.memory_space<vmem>>, vector<8x32xf32>
    %c0_7 = arith.constant 0 : index
    %c0_8 = arith.constant 0 : index
    %7 = vector.load %arg5[%c0_7, %c0_8] : memref<32x64xf32, #tpu.memory_space<vmem>>, vector<32x64xf32>
    %cst_9 = arith.constant dense<0.000000e+00> : vector<8x64xf32>
    %8 = tpu.matmul %6, %7, %cst_9 {dimension_numbers = #tpu.dot_dimension_numbers<[1], [0], [0], [1], [0, 0, 1, 1], [], []>} : vector<8x32xf32>, vector<32x64xf32>, vector<8x64xf32> -> vector<8x64xf32>
    %c0_10 = arith.constant 0 : index
    %c0_11 = arith.constant 0 : index
    %9 = vector.load %arg6[%c0_10, %c0_11] : memref<1x64xf32, #tpu.memory_space<vmem>>, vector<1x64xf32>
    %10 = vector.broadcast %9 : vector<1x64xf32> to vector<8x64xf32>
    %11 = arith.addf %8, %10 : vector<8x64xf32>
    %12 = vector.extract_strided_slice %11 {offsets = [0, 0], sizes = [8, 32], strides = [1, 1]} : vector<8x64xf32> to vector<8x32xf32>
    %cst_12 = arith.constant 0.176776692 : f32
    %13 = vector.broadcast %cst_12 : f32 to vector<8x32xf32>
    %14 = arith.mulf %12, %13 : vector<8x32xf32>
    %15 = vector.shape_cast %14 : vector<8x32xf32> to vector<1x8x32xf32>
    %16 = vector.extract_strided_slice %11 {offsets = [0, 32], sizes = [8, 32], strides = [1, 1]} : vector<8x64xf32> to vector<8x32xf32>
    %17 = vector.shape_cast %16 : vector<8x32xf32> to vector<1x8x32xf32>
    %18 = vector.shape_cast %5 : vector<8x32xf32> to vector<1x8x32xf32>
    %19 = tpu.iota {dimensions = array<i32: 2>} : vector<1x1x32xi32>
    %c0_i32 = arith.constant 0 : i32
    %20 = vector.broadcast %c0_i32 : i32 to vector<1x1x32xi32>
    %21 = arith.cmpi sge, %19, %20 : vector<1x1x32xi32>
    %c8_i32 = arith.constant 8 : i32
    %22 = vector.broadcast %c8_i32 : i32 to vector<1x1x32xi32>
    %23 = arith.cmpi slt, %19, %22 : vector<1x1x32xi32>
    %24 = arith.andi %21, %23 : vector<1x1x32xi1>
    %25 = arith.extui %24 : vector<1x1x32xi1> to vector<1x1x32xi32>
    %26 = arith.sitofp %25 : vector<1x1x32xi32> to vector<1x1x32xf32>
    %27 = vector.broadcast %26 : vector<1x1x32xf32> to vector<1x8x32xf32>
    %28 = arith.mulf %15, %27 : vector<1x8x32xf32>
    "tpu.trace_start"() <{level = 10 : i32, message = "bqd,bkd->bqk"}> : () -> ()
    %cst_13 = arith.constant dense<0.000000e+00> : vector<1x8x8xf32>
    %29 = tpu.matmul %18, %28, %cst_13 {dimension_numbers = #tpu.dot_dimension_numbers<[2], [2], [1], [1], [0, 0, 0, 1, 1, 1], [0], [0]>} : vector<1x8x32xf32>, vector<1x8x32xf32>, vector<1x8x8xf32> -> vector<1x8x8xf32>
    "tpu.trace_stop"() : () -> ()
    %cst_14 = arith.constant dense<0xFF800000> : vector<1x8xf32>
    %30 = vector.multi_reduction <maximumf>, %29, %cst_14 [2] : vector<1x8x8xf32> to vector<1x8xf32>
    %31 = vector.shape_cast %30 : vector<1x8xf32> to vector<1x8x1xf32>
    %32 = vector.broadcast %31 : vector<1x8x1xf32> to vector<1x8x8xf32>
    %33 = arith.subf %29, %32 : vector<1x8x8xf32>
    %34 = math.exp %33 : vector<1x8x8xf32>
    %cst_15 = arith.constant dense<0.000000e+00> : vector<1x8xf32>
    %35 = vector.multi_reduction <add>, %34, %cst_15 [2] : vector<1x8x8xf32> to vector<1x8xf32>
    %36 = vector.shape_cast %35 : vector<1x8xf32> to vector<1x8x1xf32>
    %37 = vector.broadcast %36 : vector<1x8x1xf32> to vector<1x8x8xf32>
    %38 = arith.divf %34, %37 : vector<1x8x8xf32>
    %39 = vector.broadcast %26 : vector<1x1x32xf32> to vector<1x8x32xf32>
    %40 = arith.mulf %17, %39 : vector<1x8x32xf32>
    "tpu.trace_start"() <{level = 10 : i32, message = "bqk,bkd->bqd"}> : () -> ()
    %cst_16 = arith.constant dense<0.000000e+00> : vector<1x8x32xf32>
    %41 = tpu.matmul %38, %40, %cst_16 {dimension_numbers = #tpu.dot_dimension_numbers<[2], [1], [1], [2], [0, 0, 0, 1, 1, 2], [0], [0]>} : vector<1x8x8xf32>, vector<1x8x32xf32>, vector<1x8x32xf32> -> vector<1x8x32xf32>
    "tpu.trace_stop"() : () -> ()
    %42 = arith.addf %18, %41 : vector<1x8x32xf32>
    %c8_i32_17 = arith.constant 8 : i32
    %43 = vector.broadcast %c8_i32_17 : i32 to vector<1x1x32xi32>
    %44 = arith.cmpi sge, %19, %43 : vector<1x1x32xi32>
    %c16_i32 = arith.constant 16 : i32
    %45 = vector.broadcast %c16_i32 : i32 to vector<1x1x32xi32>
    %46 = arith.cmpi slt, %19, %45 : vector<1x1x32xi32>
    %47 = arith.andi %44, %46 : vector<1x1x32xi1>
    %48 = arith.extui %47 : vector<1x1x32xi1> to vector<1x1x32xi32>
    %49 = arith.sitofp %48 : vector<1x1x32xi32> to vector<1x1x32xf32>
    %50 = vector.broadcast %49 : vector<1x1x32xf32> to vector<1x8x32xf32>
    %51 = arith.mulf %15, %50 : vector<1x8x32xf32>
    "tpu.trace_start"() <{level = 10 : i32, message = "bqd,bkd->bqk"}> : () -> ()
    %cst_18 = arith.constant dense<0.000000e+00> : vector<1x8x8xf32>
    %52 = tpu.matmul %18, %51, %cst_18 {dimension_numbers = #tpu.dot_dimension_numbers<[2], [2], [1], [1], [0, 0, 0, 1, 1, 1], [0], [0]>} : vector<1x8x32xf32>, vector<1x8x32xf32>, vector<1x8x8xf32> -> vector<1x8x8xf32>
    "tpu.trace_stop"() : () -> ()
    %cst_19 = arith.constant dense<0xFF800000> : vector<1x8xf32>
    %53 = vector.multi_reduction <maximumf>, %52, %cst_19 [2] : vector<1x8x8xf32> to vector<1x8xf32>
    %54 = vector.shape_cast %53 : vector<1x8xf32> to vector<1x8x1xf32>
    %55 = vector.broadcast %54 : vector<1x8x1xf32> to vector<1x8x8xf32>
    %56 = arith.subf %52, %55 : vector<1x8x8xf32>
    %57 = math.exp %56 : vector<1x8x8xf32>
    %cst_20 = arith.constant dense<0.000000e+00> : vector<1x8xf32>
    %58 = vector.multi_reduction <add>, %57, %cst_20 [2] : vector<1x8x8xf32> to vector<1x8xf32>
    %59 = vector.shape_cast %58 : vector<1x8xf32> to vector<1x8x1xf32>
    %60 = vector.broadcast %59 : vector<1x8x1xf32> to vector<1x8x8xf32>
    %61 = arith.divf %57, %60 : vector<1x8x8xf32>
    %62 = vector.broadcast %49 : vector<1x1x32xf32> to vector<1x8x32xf32>
    %63 = arith.mulf %17, %62 : vector<1x8x32xf32>
    "tpu.trace_start"() <{level = 10 : i32, message = "bqk,bkd->bqd"}> : () -> ()
    %cst_21 = arith.constant dense<0.000000e+00> : vector<1x8x32xf32>
    %64 = tpu.matmul %61, %63, %cst_21 {dimension_numbers = #tpu.dot_dimension_numbers<[2], [1], [1], [2], [0, 0, 0, 1, 1, 2], [0], [0]>} : vector<1x8x8xf32>, vector<1x8x32xf32>, vector<1x8x32xf32> -> vector<1x8x32xf32>
    "tpu.trace_stop"() : () -> ()
    %65 = arith.addf %42, %64 : vector<1x8x32xf32>
    %c16_i32_22 = arith.constant 16 : i32
    %66 = vector.broadcast %c16_i32_22 : i32 to vector<1x1x32xi32>
    %67 = arith.cmpi sge, %19, %66 : vector<1x1x32xi32>
    %c24_i32 = arith.constant 24 : i32
    %68 = vector.broadcast %c24_i32 : i32 to vector<1x1x32xi32>
    %69 = arith.cmpi slt, %19, %68 : vector<1x1x32xi32>
    %70 = arith.andi %67, %69 : vector<1x1x32xi1>
    %71 = arith.extui %70 : vector<1x1x32xi1> to vector<1x1x32xi32>
    %72 = arith.sitofp %71 : vector<1x1x32xi32> to vector<1x1x32xf32>
    %73 = vector.broadcast %72 : vector<1x1x32xf32> to vector<1x8x32xf32>
    %74 = arith.mulf %15, %73 : vector<1x8x32xf32>
    "tpu.trace_start"() <{level = 10 : i32, message = "bqd,bkd->bqk"}> : () -> ()
    %cst_23 = arith.constant dense<0.000000e+00> : vector<1x8x8xf32>
    %75 = tpu.matmul %18, %74, %cst_23 {dimension_numbers = #tpu.dot_dimension_numbers<[2], [2], [1], [1], [0, 0, 0, 1, 1, 1], [0], [0]>} : vector<1x8x32xf32>, vector<1x8x32xf32>, vector<1x8x8xf32> -> vector<1x8x8xf32>
    "tpu.trace_stop"() : () -> ()
    %cst_24 = arith.constant dense<0xFF800000> : vector<1x8xf32>
    %76 = vector.multi_reduction <maximumf>, %75, %cst_24 [2] : vector<1x8x8xf32> to vector<1x8xf32>
    %77 = vector.shape_cast %76 : vector<1x8xf32> to vector<1x8x1xf32>
    %78 = vector.broadcast %77 : vector<1x8x1xf32> to vector<1x8x8xf32>
    %79 = arith.subf %75, %78 : vector<1x8x8xf32>
    %80 = math.exp %79 : vector<1x8x8xf32>
    %cst_25 = arith.constant dense<0.000000e+00> : vector<1x8xf32>
    %81 = vector.multi_reduction <add>, %80, %cst_25 [2] : vector<1x8x8xf32> to vector<1x8xf32>
    %82 = vector.shape_cast %81 : vector<1x8xf32> to vector<1x8x1xf32>
    %83 = vector.broadcast %82 : vector<1x8x1xf32> to vector<1x8x8xf32>
    %84 = arith.divf %80, %83 : vector<1x8x8xf32>
    %85 = vector.broadcast %72 : vector<1x1x32xf32> to vector<1x8x32xf32>
    %86 = arith.mulf %17, %85 : vector<1x8x32xf32>
    "tpu.trace_start"() <{level = 10 : i32, message = "bqk,bkd->bqd"}> : () -> ()
    %cst_26 = arith.constant dense<0.000000e+00> : vector<1x8x32xf32>
    %87 = tpu.matmul %84, %86, %cst_26 {dimension_numbers = #tpu.dot_dimension_numbers<[2], [1], [1], [2], [0, 0, 0, 1, 1, 2], [0], [0]>} : vector<1x8x8xf32>, vector<1x8x32xf32>, vector<1x8x32xf32> -> vector<1x8x32xf32>
    "tpu.trace_stop"() : () -> ()
    %88 = arith.addf %65, %87 : vector<1x8x32xf32>
    %c24_i32_27 = arith.constant 24 : i32
    %89 = vector.broadcast %c24_i32_27 : i32 to vector<1x1x32xi32>
    %90 = arith.cmpi sge, %19, %89 : vector<1x1x32xi32>
    %c32_i32 = arith.constant 32 : i32
    %91 = vector.broadcast %c32_i32 : i32 to vector<1x1x32xi32>
    %92 = arith.cmpi slt, %19, %91 : vector<1x1x32xi32>
    %93 = arith.andi %90, %92 : vector<1x1x32xi1>
    %94 = arith.extui %93 : vector<1x1x32xi1> to vector<1x1x32xi32>
    %95 = arith.sitofp %94 : vector<1x1x32xi32> to vector<1x1x32xf32>
    %96 = vector.broadcast %95 : vector<1x1x32xf32> to vector<1x8x32xf32>
    %97 = arith.mulf %15, %96 : vector<1x8x32xf32>
    "tpu.trace_start"() <{level = 10 : i32, message = "bqd,bkd->bqk"}> : () -> ()
    %cst_28 = arith.constant dense<0.000000e+00> : vector<1x8x8xf32>
    %98 = tpu.matmul %18, %97, %cst_28 {dimension_numbers = #tpu.dot_dimension_numbers<[2], [2], [1], [1], [0, 0, 0, 1, 1, 1], [0], [0]>} : vector<1x8x32xf32>, vector<1x8x32xf32>, vector<1x8x8xf32> -> vector<1x8x8xf32>
    "tpu.trace_stop"() : () -> ()
    %cst_29 = arith.constant dense<0xFF800000> : vector<1x8xf32>
    %99 = vector.multi_reduction <maximumf>, %98, %cst_29 [2] : vector<1x8x8xf32> to vector<1x8xf32>
    %100 = vector.shape_cast %99 : vector<1x8xf32> to vector<1x8x1xf32>
    %101 = vector.broadcast %100 : vector<1x8x1xf32> to vector<1x8x8xf32>
    %102 = arith.subf %98, %101 : vector<1x8x8xf32>
    %103 = math.exp %102 : vector<1x8x8xf32>
    %cst_30 = arith.constant dense<0.000000e+00> : vector<1x8xf32>
    %104 = vector.multi_reduction <add>, %103, %cst_30 [2] : vector<1x8x8xf32> to vector<1x8xf32>
    %105 = vector.shape_cast %104 : vector<1x8xf32> to vector<1x8x1xf32>
    %106 = vector.broadcast %105 : vector<1x8x1xf32> to vector<1x8x8xf32>
    %107 = arith.divf %103, %106 : vector<1x8x8xf32>
    %108 = vector.broadcast %95 : vector<1x1x32xf32> to vector<1x8x32xf32>
    %109 = arith.mulf %17, %108 : vector<1x8x32xf32>
    "tpu.trace_start"() <{level = 10 : i32, message = "bqk,bkd->bqd"}> : () -> ()
    %cst_31 = arith.constant dense<0.000000e+00> : vector<1x8x32xf32>
    %110 = tpu.matmul %107, %109, %cst_31 {dimension_numbers = #tpu.dot_dimension_numbers<[2], [1], [1], [2], [0, 0, 0, 1, 1, 2], [0], [0]>} : vector<1x8x8xf32>, vector<1x8x32xf32>, vector<1x8x32xf32> -> vector<1x8x32xf32>
    "tpu.trace_stop"() : () -> ()
    %111 = arith.addf %88, %110 : vector<1x8x32xf32>
    %112 = vector.shape_cast %111 : vector<1x8x32xf32> to vector<8x32xf32>
    %c0_32 = arith.constant 0 : index
    %c0_33 = arith.constant 0 : index
    %113 = vector.load %arg7[%c0_32, %c0_33] : memref<32x32xf32, #tpu.memory_space<vmem>>, vector<32x32xf32>
    %cst_34 = arith.constant dense<0.000000e+00> : vector<8x32xf32>
    %114 = tpu.matmul %112, %113, %cst_34 {dimension_numbers = #tpu.dot_dimension_numbers<[1], [0], [0], [1], [0, 0, 1, 1], [], []>} : vector<8x32xf32>, vector<32x32xf32>, vector<8x32xf32> -> vector<8x32xf32>
    %c0_35 = arith.constant 0 : index
    %c0_36 = arith.constant 0 : index
    %115 = vector.load %arg8[%c0_35, %c0_36] : memref<1x32xf32, #tpu.memory_space<vmem>>, vector<1x32xf32>
    %116 = vector.broadcast %115 : vector<1x32xf32> to vector<8x32xf32>
    %117 = arith.addf %114, %116 : vector<8x32xf32>
    %cst_37 = arith.constant 0.000000e+00 : f32
    %118 = vector.broadcast %cst_37 : f32 to vector<8x32xf32>
    %119 = arith.maximumf %117, %118 : vector<8x32xf32>
    %120 = arith.addf %112, %119 : vector<8x32xf32>
    %c0_38 = arith.constant 0 : index
    %c0_39 = arith.constant 0 : index
    %121 = vector.load %arg9[%c0_38, %c0_39] : memref<8x32xf32, #tpu.memory_space<vmem>>, vector<8x32xf32>
    tpu.vector_store %arg9[%c0_38, %c0_39], %120 {strides = array<i32>} : memref<8x32xf32, #tpu.memory_space<vmem>>, vector<8x32xf32>,
    return
  }
  func.func @transform_0(%arg0: i32) -> (i32, i32) {
    %c0_i32 = arith.constant 0 : i32
    %c0_i32_0 = arith.constant 0 : i32
    return %arg0, %c0_i32 : i32, i32
  }
  func.func @transform_1(%arg0: i32) -> (i32, i32) {
    %c0_i32 = arith.constant 0 : i32
    %c0_i32_0 = arith.constant 0 : i32
    return %arg0, %c0_i32 : i32, i32
  }
  func.func @transform_2(%arg0: i32) -> (i32, i32) {
    %c0_i32 = arith.constant 0 : i32
    %c0_i32_0 = arith.constant 0 : i32
    %c0_i32_1 = arith.constant 0 : i32
    return %c0_i32, %c0_i32_0 : i32, i32
  }
  func.func @transform_3(%arg0: i32) -> (i32, i32) {
    %c0_i32 = arith.constant 0 : i32
    %c0_i32_0 = arith.constant 0 : i32
    %c0_i32_1 = arith.constant 0 : i32
    return %c0_i32, %c0_i32_0 : i32, i32
  }
  func.func @transform_4(%arg0: i32) -> (i32, i32) {
    %c0_i32 = arith.constant 0 : i32
    %c0_i32_0 = arith.constant 0 : i32
    %c0_i32_1 = arith.constant 0 : i32
    return %c0_i32, %c0_i32_0 : i32, i32
  }
  func.func @transform_5(%arg0: i32) -> (i32, i32) {
    %c0_i32 = arith.constant 0 : i32
    %c0_i32_0 = arith.constant 0 : i32
    %c0_i32_1 = arith.constant 0 : i32
    return %c0_i32, %c0_i32_0 : i32, i32
  }
  func.func @transform_6(%arg0: i32) -> (i32, i32) {
    %c0_i32 = arith.constant 0 : i32
    %c0_i32_0 = arith.constant 0 : i32
    %c0_i32_1 = arith.constant 0 : i32
    return %c0_i32, %c0_i32_0 : i32, i32
  }
  func.func @transform_7(%arg0: i32) -> (i32, i32) {
    %c0_i32 = arith.constant 0 : i32
    %c0_i32_0 = arith.constant 0 : i32
    %c0_i32_1 = arith.constant 0 : i32
    return %c0_i32, %c0_i32_0 : i32, i32
  }
  func.func @transform_8(%arg0: i32) -> (i32, i32) {
    %c0_i32 = arith.constant 0 : i32
    %c0_i32_0 = arith.constant 0 : i32
    return %arg0, %c0_i32 : i32, i32
  }
}

</mosaic_0001>

<bundles_post_ra>
// kernel: tpu_custom_call.1
= control target key start
LH: loop header
LB: loop body
LE: loop exit
PB: predicated region body
PF: predicated region fallthrough
CT: control target
= control target key end

     0   :  { %s2329_s0 = inlined_call_operand.hbm [shape: f32[16,32], index: 0, kind: input, shape index: {}]   ;;  %s2330_s1 = inlined_call_operand.hbm [shape: f32[16,32], index: 1, kind: input, shape index: {}]   ;;  %s2331_s2 = inlined_call_operand.hbm [shape: f32[32,32], index: 2, kind: input, shape index: {}]   ;;  %s2332_s3 = inlined_call_operand.vmem [shape: f32[1,32], index: 3, kind: input, shape index: {}]   ;;  %s2333_s4 = inlined_call_operand.hbm [shape: f32[32,64], index: 4, kind: input, shape index: {}]   ;;  %s2334_s5 = inlined_call_operand.vmem [shape: f32[1,64], index: 5, kind: input, shape index: {}]   ;;  %s2335_s6 = inlined_call_operand.hbm [shape: f32[32,32], index: 6, kind: input, shape index: {}]   ;;  %s2336_s7 = inlined_call_operand.vmem [shape: f32[1,32], index: 7, kind: input, shape index: {}]   ;;  %s2337_s8 = inlined_call_operand.hbm [shape: f32[16,32], index: 8, kind: output, shape index: {}]  }
   0x1   :  { %2343 = sst [smem:[#allocation19_spill]] %s2331_s2 }
   0x2   :  { %2344 = sst [smem:[#allocation20_spill]] %s2333_s4 }
   0x3   :  { %2345 = sst [smem:[#allocation21_spill]] %s2335_s6 }
   0x4   :  { %13 = vsyncpa [#allocation3], 0 }
   0x5   :  { %15 = vsyncpa [#allocation3 + $0x1], 0 }
   0x6   :  { %16 = vsyncpa [#allocation6], 0 }
   0x7   :  { %18 = vsyncpa [#allocation6 + $0x1], 0 }
   0x8   :  { %19 = vsyncpa [#allocation9], 0 }
   0x9   :  { %20 = vsyncpa [#allocation4], 0 }
   0xa   :  { %22 = vsyncpa [#allocation4 + $0x1], 0  ;;  %s2013_s27 = smov 0   ;;  %s2015_s28 = smov 0  }
   0xb   :  { %s2017_s29 = smov 0   ;;  %s2019_s30 = smov 0  }
   0xc LB: > { %2346 = sst [smem:[#allocation17_spill]] %s1950_s29  ;;  %s2034_s9 = sadd.s32 4294967295, %s1954_s30   ;;  %s1954_s30 = sphi %s2019_s30, %s2371_s30   ;;  %s1950_s29 = sphi %s2017_s29, %s2368_s29   ;;  %s1946_s28 = sphi %s2015_s28, %s2370_s28   ;;  %s1942_s27 = sphi %s2013_s27, %s2369_s27  }
   0xd   : > { %s1493_s10 = sadd.s32 4294967294, %s1954_s30   ;;  %p48_p0 = scmp.ne.s32.totalorder %s1946_s28, %s1942_s27 }
   0xe   : > { %p2338_p1 = scmp.eq.s32.totalorder %s2034_s9, 0  ;;  %p230_p3 = scmp.eq.s32.totalorder %s1493_s10, 1 }
   0xf   : > { %p1494_p5 = scmp.ge.s32.totalorder %s1954_s30, 1  ;;  %p237_p7 = scmp.lt.s32.totalorder %s1954_s30, 3 }
  0x10   : > { %p2043_p4 = por %p2338_p1, %p48_p0  ;;  %p2048_p6 = por %p230_p3, %p48_p0 }
  0x11   : > { %p2053_p8 = pnand %p1494_p5, %p237_p7  ;;  %s1956_s14 = smov [#allocation7]  }
  0x12   : > { %s2347_s11 = scalar_select %p2043_p4, 1, 0 }
  0x13   : > { %s2348_s12 = scalar_select %p2048_p6, 1, 0 }
  0x14   : > { %s2349_s13 = scalar_select %p2053_p8, 1, 0 }
  0x15   : > { %s249_s15 = sshll.u32 %s1956_s14, 4  ;;  %p1658_p9 = pneg %p2053_p8  ;;  %s250_s15 = int_to_ptr.vmem [resolvable:$true] %s249_s15 }
  0x16   : > { %s1957_s17 = smov [#allocation8]   ;;  %s1958_s19 = smov [#allocation10]  }
  0x17   : > { %p2062_p11 = pnand %p1658_p9, %p2338_p1  ;;  %s265_s18 = sshll.u32 %s1957_s17, 4  ;;  %s266_s18 = int_to_ptr.vmem [resolvable:$true] %s265_s18 }
  0x18   : > { %s281_s20 = sshll.u32 %s1958_s19, 4  ;;  %s1755_s21 = scalar_lea.vmem %s250_s15, 512  ;;  %s282_s20 = int_to_ptr.vmem [resolvable:$true] %s281_s20 }
  0x19   : > { %p1746_p12 = pneg %p2062_p11  ;;  %p1756_p13 = scmp.ne.s32.totalorder %s250_s15, %s1755_s21 }
  0x1a   : > { %p1763_p5 = scmp.lt.s32.totalorder %s250_s15, %s250_s15  ;;  %p1764_p7 = scmp.lt.s32.totalorder %s1755_s21, %s1755_s21 }
  0x1b   : > { %p1758_p0 = pnand %p1756_p13, %p1746_p12 }
  0x1c   : > { %p1765_p9 = por %p1764_p7, %p1763_p5 }
  0x1d   : > { %p1759_p3 = pneg %p1758_p0 }
  0x1f   : > { %p1766_p10 = pnand %p1765_p9, %p1759_p3 }
  0x21   : > { %1769 = shalt.err (!%p1766_p10)
}
  0x22   : > { %s1959_s22 = smov 128   ;;  %s1960_s23 = smov 8  }
  0x23   : > { %s2351_s2 = sld [smem:[#allocation19_spill]]  ;;  %s1781_s26 = scalar_lea.vmem %s266_s18, 512 }
  0x24   : > { %p1782_p1 = scmp.ne.s32.totalorder %s266_s18, %s1781_s26  ;;  %p1789_p2 = scmp.lt.s32.totalorder %s266_s18, %s266_s18 }
  0x25   : > { %p1790_p6 = scmp.lt.s32.totalorder %s1781_s26, %s1781_s26 }
  0x26   : > { %p1784_p13 = pnand %p1782_p1, %p1746_p12 }
  0x27   : > { %p1791_p5 = por %p1790_p6, %p1789_p2 }
  0x28   : > { %p1785_p0 = pneg %p1784_p13 }
  0x29   : > { %1661 = dma.hbm_to_vmem [thread:$0]  (!%p2062_p11), %s2351_s2, 512, %s250_s15, [#allocation6], %s1959_s22, %s1959_s22, %s1960_s23  }
  0x2a   : > { %p1792_p3 = pnand %p1791_p5, %p1785_p0 }
  0x2c   : > { %1795 = shalt.err (!%p1792_p3)
}
  0x2d   : > { %s2352_s4 = sld [smem:[#allocation20_spill]]  ;;  %s1807_s15 = scalar_lea.vmem %s282_s20, 512 }
  0x2e   : > { %p1808_p10 = scmp.ne.s32.totalorder %s282_s20, %s1807_s15  ;;  %p1815_p9 = scmp.lt.s32.totalorder %s282_s20, %s282_s20 }
  0x2f   : > { %p1816_p13 = scmp.lt.s32.totalorder %s1807_s15, %s1807_s15 }
  0x30   : > { %p1810_p7 = pnand %p1808_p10, %p1746_p12 }
  0x31   : > { %p1817_p4 = por %p1816_p13, %p1815_p9 }
  0x32   : > { %p1811_p1 = pneg %p1810_p7 }
  0x33   : > { %1664 = dma.hbm_to_vmem [thread:$0]  (!%p2062_p11), %s2352_s4, 512, %s266_s18, [#allocation9], %s1959_s22, %s1959_s22, %s1960_s23  }
  0x34   : > { %p1818_p2 = pnand %p1817_p4, %p1811_p1 }
  0x36   : > { %1821 = shalt.err (!%p1818_p2)
}
  0x37   : > { %s2353_s6 = sld [smem:[#allocation21_spill]]  ;;  %s2093_s18 = sadd.s32 1, %s1954_s30  }
  0x38   : > { %s32_s21 = ssub.s32 %s1954_s30, %s2093_s18  ;;  %s35_s16 = sadd.s32 1, %s1950_s29 }
  0x39   : > { %p33_p4 = scmp.eq.s32.totalorder %s32_s21, 0  ;;  %p42_p6 = scmp.ne.s32.totalorder %s1950_s29, %s1946_s28 }
  0x3a   : > { %p43_p12 = scmp.eq.s32.totalorder %s1954_s30, 0  ;;  %p1682_p0 = scmp.lt.s32.totalorder %s1954_s30, 2 }
  0x3b   : > { %s2103_s24 = scalar_select %p33_p4, %s1950_s29, %s35_s16  }
  0x3c   : > { %p44_p5 = por %p43_p12, %p42_p6  ;;  %p2355_p3 = scmp.eq.s32.totalorder %s2034_s9, 1 }
  0x3d   : > { %1667 = dma.hbm_to_vmem [thread:$0]  (!%p2062_p11), %s2353_s6, 512, %s282_s20, [#allocation9], %s1959_s22, %s1959_s22, %s1960_s23  }
  0x3e   : > { %2354 = sst [smem:[#allocation18_spill]] %s2103_s24  ;;  %p2107_p10 = por %p2355_p3, %p42_p6 }
  0x3f   : > { %s298_s26 = sand.u32 1, %s1950_s29   ;;  %s1500_s10 = sshll.u32 %s1954_s30, 7 }
  0x40   : > { %s2356_s25 = scalar_select %p2107_p10, 1, 0 }
  0x41   : > { %s2113_s20 = sshll.u32 %s298_s26, 3  ;;  %s2118_s14 = scalar_lea.hbm %s2329_s0, %s1500_s10 }
  0x42   : > { %s302_s15 = scalar_lea.vmem [#allocation2], %s2113_s20  ;;  %p2121_p11 = pnand %p1682_p0, %p44_p5 }
  0x43   : > { %s309_s17 = sshll.u32 %s302_s15, 4  ;;  %s2128_s2 = scalar_lea.hbm %s2330_s1, %s1500_s10  ;;  %s310_s17 = int_to_ptr.vmem [resolvable:$true] %s309_s17 }
  0x44   : > { %s299_s22 = scalar_lea.sflag [#allocation3], %s298_s26  ;;  %s1822_s23 = scalar_lea.hbm %s2118_s14, 128 }
  0x45   : > { %p1823_p7 = scmp.ne.s32.totalorder %s2118_s14, %s1822_s23  ;;  %p1824_p1 = pneg %p2121_p11 }
  0x46   : > { %s1827_s6 = scalar_lea.hbm %s2329_s0, 256  ;;  %p1828_p2 = scmp.lt.s32.totalorder %s2118_s14, %s2329_s0 }
  0x47   : > { %p1825_p9 = pnand %p1824_p1, %p1823_p7  ;;  %p1829_p4 = scmp.lt.s32.totalorder %s1827_s6, %s1822_s23 }
  0x49   : > { %p1826_p13 = pneg %p1825_p9  ;;  %p1830_p6 = por %p1829_p4, %p1828_p2 }
  0x4b   : > { %p1831_p12 = pnand %p1830_p6, %p1826_p13 }
  0x4d   : > { %1834 = shalt.err (!%p1831_p12)
}
  0x4e   : > { %s1835_s26 = scalar_lea.vmem %s310_s17, 128  ;;  %s1961_s10 = smov [#allocation2]  }
  0x4f   : > { %p1836_p0 = scmp.ne.s32.totalorder %s310_s17, %s1835_s26  ;;  %s1840_s21 = sshll.u32 %s1961_s10, 4  ;;  %s1841_s21 = int_to_ptr.vmem [resolvable:$false] %s1840_s21 }
  0x50   : > { %s1842_s4 = scalar_lea.vmem %s1841_s21, 256  ;;  %p1843_p7 = scmp.lt.s32.totalorder %s310_s17, %s1841_s21 }
  0x51   : > { %p1838_p5 = pnand %p1836_p0, %p1824_p1  ;;  %p1844_p9 = scmp.lt.s32.totalorder %s1842_s4, %s1835_s26 }
  0x53   : > { %p1839_p3 = pneg %p1838_p5  ;;  %p1845_p10 = por %p1844_p9, %p1843_p7 }
  0x55   : > { %p1846_p8 = pnand %p1845_p10, %p1839_p3 }
  0x57   : > { %1849 = shalt.err (!%p1846_p8)
}
  0x58   : > { %1671 = dma.hbm_to_vmem [thread:$0]  (!%p2121_p11), %s2118_s14, 128, %s310_s17, %s299_s22  }
  0x59   : > { %s316_s6 = sand.u32 1, %s1954_s30   ;;  %s320_s29 = scalar_lea.vmem [#allocation5], %s2113_s20 }
  0x5a   : > { %s327_s24 = sshll.u32 %s320_s29, 4  ;;  %s317_s16 = scalar_lea.sflag [#allocation6], %s316_s6  ;;  %s328_s24 = int_to_ptr.vmem [resolvable:$true] %s327_s24 }
  0x5b   : > { %s1850_s23 = scalar_lea.hbm %s2128_s2, 128  ;;  %s1855_s10 = scalar_lea.hbm %s2330_s1, 256 }
  0x5c   : > { %p1851_p13 = scmp.ne.s32.totalorder %s2128_s2, %s1850_s23  ;;  %p1856_p2 = scmp.lt.s32.totalorder %s2128_s2, %s2330_s1 }
  0x5d   : > { %p1857_p4 = scmp.lt.s32.totalorder %s1855_s10, %s1850_s23 }
  0x5e   : > { %p1853_p8 = pnand %p1851_p13, %p1824_p1 }
  0x5f   : > { %p1858_p6 = por %p1857_p4, %p1856_p2 }
  0x60   : > { %p1854_p10 = pneg %p1853_p8 }
  0x62   : > { %p1859_p12 = pnand %p1858_p6, %p1854_p10 }
  0x64   : > { %1862 = shalt.err (!%p1859_p12)
}
  0x65   : > { %s1863_s20 = scalar_lea.vmem %s328_s24, 128  ;;  %s1962_s14 = smov [#allocation5]  }
  0x66   : > { %p1864_p0 = scmp.ne.s32.totalorder %s328_s24, %s1863_s20  ;;  %s1868_s17 = sshll.u32 %s1962_s14, 4  ;;  %s1869_s17 = int_to_ptr.vmem [resolvable:$false] %s1868_s17 }
  0x67   : > { %s1870_s22 = scalar_lea.vmem %s1869_s17, 256  ;;  %p1871_p7 = scmp.lt.s32.totalorder %s328_s24, %s1869_s17 }
  0x68   : > { %p1866_p5 = pnand %p1864_p0, %p1824_p1  ;;  %p1872_p9 = scmp.lt.s32.totalorder %s1870_s22, %s1863_s20 }
  0x6a   : > { %p1867_p3 = pneg %p1866_p5  ;;  %p1873_p13 = por %p1872_p9, %p1871_p7 }
  0x6c   : > { %p1874_p8 = pnand %p1873_p13, %p1867_p3 }
  0x6e   : > { %1877 = shalt.err (!%p1874_p8)
}
  0x6f   : > { %1674 = dma.hbm_to_vmem [thread:$0]  (!%p2121_p11), %s2128_s2, 128, %s328_s24, %s317_s16  }
  0x70   : > { %p2358_p10 = scmp.ne.s32.totalorder %s2349_s13, 0 }
  0x71   : > { %s2173_s6 = sand.u32 (!%p2358_p10), 1, %s1946_s28   ;;  %p2359_p1 = scmp.ne.s32.totalorder (!%p2358_p10), %s2347_s11, 0 }
  0x72   : > { %336 = sbr.rel (%p2358_p10) target bundleno = 1266 (0x4f2), region = 52  ;;  %s2176_s29 = sshll.u32 (!%p2358_p10), %s2173_s6, 3 }
  0x73   : > { %s339_s23 = scalar_lea.sflag (!%p2358_p10), [#allocation3], %s2173_s6  ;;  %s342_s15 = scalar_lea.vmem (!%p2358_p10), [#allocation2], %s2176_s29 }
  0x77   : > { %1921 = dma.done.wait (%p2359_p1), %s339_s23, 128  }
  0x78   : > { %1923 = vsyncadd (%p2359_p1), %s339_s23, 4294967168  ;;  %s347_s2 = sand.u32 1, %s2034_s9   ;;  %s351_s19 = scalar_lea.vmem [#allocation5], %s2176_s29 }
  0x79   : > { %s348_s13 = scalar_lea.sflag [#allocation6], %s347_s2 }
  0x7a   : > { %1925 = dma.done.wait (%p2359_p1), %s348_s13, 128  }
  0x7b   : > { %1927 = vsyncadd (%p2359_p1), %s348_s13, 4294967168  ;;  %p2360_p11 = scmp.eq.s32.totalorder %s2034_s9, 0 }
  0x7d   : > { %1929 = dma.done.wait (%p2360_p11), [#allocation6], 512   ;;  %p2361_p2 = pmov %p2360_p11 }
  0x7f   : > { %1931 = vsyncadd (%p2361_p2), [#allocation6], 4294966784  ;;  %p2362_p4 = pmov %p2361_p2 }
  0x80   : > { %p2363_p6 = pmov %p2361_p2 }
  0x81   : > { %1933 = dma.done.wait (%p2362_p4), [#allocation9], 1024  }
  0x82   : > { %1935 = vsyncadd (%p2363_p6), [#allocation9], 4294966272  ;;  %v1963_v0 = vmov 0.0   ;;  %vm1964_vm0 = vmmov 0   ;;  %v491_v1 = vld [vmem:[#allocation8 + $0x18] sm:$0xff]  ;;  %v490_v2 = vld [vmem:[#allocation8 + $0x10] sm:$0xff]  ;;  %v573_v11 = vlaneseq }
  0x83   : > { %1578 = vmatprep.subr.mxu1 %v1963_v0  ;;  %1567 = vmatprep.subr.mxu0 %v1963_v0  ;;  %v405_v3 = vld [vmem:[#allocation7 + $0x18] sm:$0xff]  ;;  %v489_v4 = vld [vmem:[#allocation8 + $0x8] sm:$0xff]  ;;  %v404_v5 = vld [vmem:[#allocation7 + $0x10] sm:$0xff]  ;;  %vm413_vm1 = vcmask 261120   ;;  %vm657_vm12 = vcmask 64512   ;;  %s1965_s10 = smov 32  }
  0x84   : > { %1586 = vmatprep.mubr.msk.f32.mxu1 %vm1964_vm0, %v1963_v0  ;;  %1575 = vmatprep.mubr.msk.f32.mxu0 %vm1964_vm0, %v1963_v0  ;;  %v403_v6 = vld [vmem:[#allocation7 + $0x8] sm:$0xff]  ;;  %v488_v7 = vld [vmem:[#allocation8] sm:$0xff]  ;;  %v487_v8 = vld [vmem:[%s351_s19] sm:$0xff]  ;;  %v574_v12 = vand.u32 127, %v573_v11  ;;  %s1966_s21 = smov 96   ;;  %s1533_s14 = sshll.u32 %s2034_s9, 7 }
  0x85   : > { %1579 = vmatpush3.msra.mxu1 %v491_v1  ;;  %1568 = vmatpush3.msra.mxu0 %v405_v3  ;;  %v402_v9 = vld [vmem:[#allocation7] sm:$0xff]  ;;  %s400_s17 = scalar_lea.vmem [#allocation11], %s2176_s29  ;;  %s1370_s2 = scalar_lea.hbm %s2337_s8, %s1533_s14 }
  0x86   : > { %1580 = vmatprep.subr.mxu1 %v1963_v0  ;;  %1569 = vmatprep.subr.mxu0 %v1963_v0  ;;  %v401_v10 = vld [vmem:[%s342_s15] sm:$0xff]  ;;  %vm752_vm2 = vcmp.ge.s32.totalorder %v574_v12, 8  ;;  %vm753_vm3 = vcmp.lt.s32.totalorder %v574_v12, 16  ;;  %vm576_vm4 = vcmp.lt.s32.totalorder %v574_v12, 8  ;;  %vm925_vm6 = vcmp.ge.s32.totalorder %v574_v12, 16  ;;  %s1372_s22 = sshll.u32 %s400_s17, 4  ;;  %s1373_s22 = int_to_ptr.vmem [resolvable:$true] %s1372_s22 }
  0x87   : > { %1581 = vmatpush3.msra.mxu1 %v490_v2  ;;  %1570 = vmatpush3.msra.mxu0 %v404_v5  ;;  %v1512_v13 = vld [vmem:[%s2334_s5] ss:$0 sm:$0xff]  ;;  %vm754_vm5 = vmand %vm752_vm2, %vm753_vm3  ;;  %vm926_vm7 = vcmp.lt.s32.totalorder %v574_v12, 24  ;;  %v1514_v18 = vsel %vm576_vm4, 1.0, %v1963_v0  ;;  %vm1098_vm9 = vcmp.ge.s32.totalorder %v574_v12, 24  ;;  %vm1099_vm10 = vcmp.lt.s32.totalorder %v574_v12, 32 }
  0x88   : > { %1582 = vmatprep.subr.mxu1 %v1963_v0  ;;  %1571 = vmatprep.subr.mxu0 %v1963_v0  ;;  %v1518_v19 = vsel %vm754_vm5, 1.0, %v1963_v0  ;;  %v1510_v21 = vld [vmem:[%s2332_s3] ss:$0 sm:$0xff]  ;;  %vm927_vm8 = vmand %vm925_vm6, %vm926_vm7  ;;  %s1359_s13 = scalar_lea.sflag [#allocation4], %s2173_s6  ;;  %s1878_s19 = scalar_lea.vmem %s1373_s22, 128 }
  0x89   : > { %1583 = vmatpush3.msra.mxu1 %v489_v4  ;;  %1572 = vmatpush3.msra.mxu0 %v403_v6  ;;  %v1522_v26 = vsel %vm927_vm8, 1.0, %v1963_v0  ;;  %vm1100_vm11 = vmand %vm1098_vm9, %vm1099_vm10  ;;  %p1879_p12 = scmp.ne.s32.totalorder %s1373_s22, %s1878_s19  ;;  %p2364_p0 = scmp.ne.s32.totalorder %s2356_s25, 0 }
  0x8a   : > { %1584 = vmatprep.subr.mxu1 %v1963_v0  ;;  %1573 = vmatprep.subr.mxu0 %v1963_v0  ;;  %v1526_v28 = vsel %vm1100_vm11, 1.0, %v1963_v0  ;;  %s1967_s11 = smov [#allocation11]  }
  0x8b   : > { %1585 = vmatpush3.msra.mxu1 %v488_v7  ;;  %1574 = vmatpush3.msra.mxu0 %v402_v9  ;;  %p1880_p5 = pnand %p1879_p12, %p2364_p0  ;;  %s1882_s24 = sshll.u32 %s1967_s11, 4  ;;  %s1883_s24 = int_to_ptr.vmem [resolvable:$false] %s1882_s24 }
  0x8c   : > { %1587 = vmatmul.mubr.msk.f32.vlgmr.msra.gmra.mxu1 %vm413_vm1, %v487_v8  ;;  %1576 = vmatmul.mubr.msk.f32.vlgmr.msra.gmra.mxu0 %vm413_vm1, %v401_v10  ;;  %s1884_s9 = scalar_lea.vmem %s1883_s24, 256  ;;  %p1885_p7 = scmp.lt.s32.totalorder %s1373_s22, %s1883_s24 }
  0x8d   : > { %1589 = vmatprep.subr.mxu1 %v1963_v0  ;;  %1599 = vmatprep.subr.mxu0 %v1963_v0  ;;  %p1881_p3 = pneg %p1880_p5  ;;  %p1886_p9 = scmp.lt.s32.totalorder %s1884_s9, %s1878_s19 }
  0x8e   : > { %1591 = vmatprep.mubr.msk.f32.mxu1 %vm1964_vm0, %v1963_v0  ;;  %1601 = vmatprep.mubr.msk.f32.mxu0 %vm1964_vm0, %v1963_v0 }
  0x8f   : > { %p1887_p13 = por %p1886_p9, %p1885_p7 }
  0x91   : > { %p1888_p8 = pnand %p1887_p13, %p1881_p3 }
 0x14c   : > { %v568_v14 = vpop.f32.mrf.mxu1  ;;  %v483_v16 = vpop.f32.mrf.mxu0 }
 0x14d   : > { %v2223_v15 = vadd.f32 %v1512_v13, %v568_v14  ;;  %v2231_v25 = vadd.f32 %v1510_v21, %v483_v16 }
 0x14e   : > { %v1588_v17 = vpop.f32.mrf.mxu1  ;;  %v1577_v22 = vpop.f32.mrf.mxu0 }
 0x14f   : > { %v572_v20 = vmul.f32 0.17677669, %v2223_v15 }
 0x151   : > { %v580_v23 = vmul.f32 %v1514_v18, %v572_v20  ;;  %v757_v24 = vmul.f32 %v1518_v19, %v572_v20  ;;  %v930_v27 = vmul.f32 %v1522_v26, %v572_v20  ;;  %v1103_v29 = vmul.f32 %v1526_v28, %v572_v20 }
 0x153   : > { %1590 = vmatpush3.xpose.msk.msra.mxu1 %vm413_vm1, %v580_v23  ;;  %1600 = vmatpush3.xpose.msk.msra.mxu0 %vm413_vm1, %v757_v24  ;;  %v1274_v23 = vld [vmem:[#allocation10 + $0x18] sm:$0xff]  ;;  %v1273_v24 = vld [vmem:[#allocation10 + $0x10] sm:$0xff] }
 0x154   : > { %1609 = vmatprep.subr.mxu0 %v1963_v0  ;;  %1594 = vmatprep.subr.mxu1 %v1963_v0 }
 0x156   : > { %1592 = vmatmul.mubr.msk.f32.vlgmr.msra.gmra.mxu1 %vm413_vm1, %v2231_v25  ;;  %1602 = vmatmul.mubr.msk.f32.vlgmr.msra.gmra.mxu0 %vm413_vm1, %v2231_v25 }
 0x157   : > { %1610 = vmatpush3.xpose.msk.msra.mxu0 %vm413_vm1, %v930_v27  ;;  %1611 = vmatprep.mubr.msk.f32.mxu0 %vm1964_vm0, %v1963_v0  ;;  %v1271_v27 = vld [vmem:[#allocation10] sm:$0xff] }
 0x158   : > { %1619 = vmatprep.subr.mxu0 %v1963_v0  ;;  %1596 = vmatprep.mubr.msk.f32.mxu1 %vm1964_vm0, %v1963_v0 }
 0x15a   : > { %1612 = vmatmul.mubr.msk.f32.vlgmr.msra.gmra.mxu0 %vm413_vm1, %v2231_v25 }
 0x15b   : > { %1620 = vmatpush3.xpose.msk.msra.mxu0 %vm413_vm1, %v1103_v29  ;;  %1621 = vmatprep.mubr.msk.f32.mxu0 %vm1964_vm0, %v1963_v0 }
 0x15c   : > { %1629 = vmatprep.subr.mxu0 %v1963_v0 }
 0x15e   : > { %1622 = vmatmul.mubr.msk.f32.vlgmr.msra.gmra.mxu0 %vm413_vm1, %v2231_v25 }
 0x15f   : > { %1637 = vmatprep.mubr.msk.f32.mxu0 %vm1964_vm0, %v1963_v0  ;;  %1630 = vmatpush3.msra.mxu0 %v1274_v23 }
 0x160   : > { %1631 = vmatprep.subr.mxu0 %v1963_v0 }
 0x161   : > { %1632 = vmatpush3.msra.mxu0 %v1273_v24 }
 0x162   : > { %1633 = vmatprep.subr.mxu0 %v1963_v0 }
 0x216   : > { %v653_v30 = vpop.f32.mrf.mxu1  ;;  %v827_v31 = vpop.f32.mrf.mxu0 }
 0x217   : > { %v658_v32 = vsel %vm657_vm12, %v653_v30, -inf  ;;  %v831_v36 = vsel %vm657_vm12, %v827_v31, -inf }
 0x218   : > { %659 = vmax.xlane.f32.xlu0 %v658_v32  ;;  %v1593_v33 = vpop.f32.mrf.mxu1  ;;  %v1603_v34 = vpop.f32.mrf.mxu0 }
 0x21a   : > { %v1000_v35 = vpop.f32.mrf.mxu0 }
 0x21b   : > { %v1004_v37 = vsel %vm657_vm12, %v1000_v35, -inf }
 0x21c   : > { %832 = vmax.xlane.f32.xlu0 %v831_v36  ;;  %1005 = vmax.xlane.f32.xlu1 %v1004_v37  ;;  %v1613_v38 = vpop.f32.mrf.mxu0 }
 0x21e   : > { %v1173_v39 = vpop.f32.mrf.mxu0 }
 0x21f   : > { %v1177_v40 = vsel %vm657_vm12, %v1173_v39, -inf }
 0x220   : > { %1178 = vmax.xlane.f32.xlu1 %v1177_v40  ;;  %v1623_v41 = vpop.f32.mrf.mxu0 }
 0x231   : > { %843 = vrot.lane.b32.xlu1 %v1518_v19, %s1965_s10 }
 0x232   : > { %670 = vrot.lane.b32.xlu0 %v1514_v18, %s1965_s10 }
 0x235   : > { %1016 = vrot.lane.b32.xlu1 %v1522_v26, %s1965_s10  ;;  %v1272_v26 = vld [vmem:[#allocation10 + $0x8] sm:$0xff] }
 0x236   : > { %1634 = vmatpush3.msra.mxu0 %v1272_v26 }
 0x237   : > { %1635 = vmatprep.subr.mxu0 %v1963_v0 }
 0x238   : > { %1636 = vmatpush3.msra.mxu0 %v1271_v27 }
 0x239   : > { %1189 = vrot.lane.b32.xlu1 %v1526_v28, %s1965_s10 }
 0x2a1   : > { %v660_v42 = vpop.xlane.xlu0 %659 }
 0x2a2   : > { %v661_v43 = vsub.f32 %v653_v30, %v660_v42 }
 0x2a4   : > { %v662_v44 = vmul.f32 1.442695, %v661_v43 }
 0x2a5   : > { %v833_v45 = vpop.xlane.xlu0 %832  ;;  %v1006_v46 = vpop.xlane.xlu1 %1005 }
 0x2a6   : > { %1728 = vpow2.f32 %v662_v44  ;;  %v834_v47 = vsub.f32 %v827_v31, %v833_v45  ;;  %v1007_v48 = vsub.f32 %v1000_v35, %v1006_v46 }
 0x2a8   : > { %v835_v49 = vmul.f32 1.442695, %v834_v47  ;;  %v1008_v50 = vmul.f32 1.442695, %v1007_v48 }
 0x2a9   : > { %v1179_v51 = vpop.xlane.xlu1 %1178  ;;  %v671_v4 = vpop.permute.xlu0 %670 }
 0x2aa   : > { %1730 = vpow2.f32 %v835_v49  ;;  %v1180_v52 = vsub.f32 %v1173_v39, %v1179_v51  ;;  %v673_v6 = vmul.f32 %v671_v4, %v2223_v15 }
 0x2ab   : > { %1732 = vpow2.f32 %v1008_v50 }
 0x2ac   : > { %v1181_v53 = vmul.f32 1.442695, %v1180_v52 }
 0x2ad   : > { %v844_v62 = vpop.permute.xlu1 %843 }
 0x2ae   : > { %1734 = vpow2.f32 %v1181_v53  ;;  %v846_v1 = vmul.f32 %v844_v62, %v2223_v15 }
 0x2b1   : > { %v1017_v63 = vpop.permute.xlu1 %1016 }
 0x2b2   : > { %v1019_v2 = vmul.f32 %v1017_v63, %v2223_v15 }
 0x2b3   : > { %v1729_v54 = vpop.eup %1728 }
 0x2b4   : > { %v664_v55 = vsel %vm657_vm12, %v1729_v54, 0.0 }
 0x2b5   : > { %665 = vadd.xlane.f32.xlu0 %v664_v55  ;;  %v1190_v3 = vpop.permute.xlu1 %1189 }
 0x2b6   : > { %v1192_v5 = vmul.f32 %v1190_v3, %v2223_v15 }
 0x2b7   : > { %v1731_v56 = vpop.eup %1730 }
 0x2b8   : > { %v1733_v57 = vpop.eup %1732  ;;  %v837_v58 = vsel %vm657_vm12, %v1731_v56, 0.0 }
 0x2b9   : > { %v1010_v59 = vsel %vm657_vm12, %v1733_v57, 0.0  ;;  %838 = vadd.xlane.f32.xlu1 %v837_v58 }
 0x2ba   : > { %1011 = vadd.xlane.f32.xlu0 %v1010_v59 }
 0x2bb   : > { %v1735_v60 = vpop.eup %1734 }
 0x2bc   : > { %v1183_v61 = vsel %vm657_vm12, %v1735_v60, 0.0 }
 0x2be   : > { %1184 = vadd.xlane.f32.xlu0 %v1183_v61 }
 0x2ca   : > { %848 = vrot.lane.b32.xlu1 %v846_v1, %s1966_s21 }
 0x2ce   : > { %1021 = vrot.lane.b32.xlu1 %v1019_v2, %s1966_s21 }
 0x2d2   : > { %1194 = vrot.lane.b32.xlu1 %v1192_v5, %s1966_s21 }
 0x2d4   : > { %675 = vrot.lane.b32.xlu0 %v673_v6, %s1966_s21 }
 0x33e   : > { %v666_v7 = vpop.xlane.xlu0 %665 }
 0x33f   : > { %1736 = vrcp.f32 %v666_v7 }
 0x342   : > { %v839_v8 = vpop.xlane.xlu1 %838 }
 0x343   : > { %v1012_v9 = vpop.xlane.xlu0 %1011  ;;  %1738 = vrcp.f32 %v839_v8 }
 0x344   : > { %1740 = vrcp.f32 %v1012_v9 }
 0x346   : > { %v849_v11 = vpop.permute.xlu1 %848 }
 0x347   : > { %v1185_v10 = vpop.xlane.xlu0 %1184 }
 0x348   : > { %1742 = vrcp.f32 %v1185_v10 }
 0x34a   : > { %v1022_v16 = vpop.permute.xlu1 %1021 }
 0x34b   : > { %v676_v12 = vpop.permute.xlu0 %675 }
 0x34c   : > { %v1737_v13 = vpop.eup %1736  ;;  %1595 = vmatpush3.msra.mxu1 %v676_v12 }
 0x34d   : > { %1604 = vmatprep.subr.mxu1 %v1963_v0  ;;  %v668_v14 = vmul.f32 %v1737_v13, %v1729_v54 }
 0x34e   : > { %v1195_v21 = vpop.permute.xlu1 %1194 }
 0x34f   : > { %1597 = vmatmul.mubr.msk.f32.vlgmr.msra.gmra.mxu1 %vm657_vm12, %v668_v14 }
 0x350   : > { %v1739_v15 = vpop.eup %1738  ;;  %1605 = vmatpush3.msra.mxu1 %v849_v11  ;;  %1606 = vmatprep.mubr.msk.f32.mxu1 %vm1964_vm0, %v1963_v0 }
 0x351   : > { %1614 = vmatprep.subr.mxu1 %v1963_v0  ;;  %v841_v17 = vmul.f32 %v1739_v15, %v1731_v56  ;;  %v1741_v18 = vpop.eup %1740 }
 0x352   : > { %v1014_v19 = vmul.f32 %v1741_v18, %v1733_v57 }
 0x353   : > { %1607 = vmatmul.mubr.msk.f32.vlgmr.msra.gmra.mxu1 %vm657_vm12, %v841_v17 }
 0x354   : > { %1615 = vmatpush3.msra.mxu1 %v1022_v16  ;;  %1616 = vmatprep.mubr.msk.f32.mxu1 %vm1964_vm0, %v1963_v0 }
 0x355   : > { %1624 = vmatprep.subr.mxu1 %v1963_v0  ;;  %v1743_v20 = vpop.eup %1742 }
 0x356   : > { %v1187_v22 = vmul.f32 %v1743_v20, %v1735_v60 }
 0x357   : > { %1617 = vmatmul.mubr.msk.f32.vlgmr.msra.gmra.mxu1 %vm657_vm12, %v1014_v19 }
 0x358   : > { %1625 = vmatpush3.msra.mxu1 %v1195_v21  ;;  %1626 = vmatprep.mubr.msk.f32.mxu1 %vm1964_vm0, %v1963_v0  ;;  %v1530_v0 = vld [vmem:[%s2336_s7] ss:$0 sm:$0xff] }
 0x35b   : > { %1627 = vmatmul.mubr.msk.f32.vlgmr.msra.gmra.mxu1 %vm657_vm12, %v1187_v22 }
 0x40f   : > { %v747_v28 = vpop.f32.mrf.mxu1 }
 0x410   : > { %v751_v32 = vadd.f32 %v747_v28, %v2231_v25 }
 0x411   : > { %v1598_v29 = vpop.f32.mrf.mxu1 }
 0x413   : > { %v920_v30 = vpop.f32.mrf.mxu1 }
 0x414   : > { %v924_v34 = vadd.f32 %v920_v30, %v751_v32 }
 0x415   : > { %v1608_v31 = vpop.f32.mrf.mxu1 }
 0x417   : > { %v1093_v33 = vpop.f32.mrf.mxu1 }
 0x418   : > { %v1097_v36 = vadd.f32 %v1093_v33, %v924_v34 }
 0x419   : > { %v1618_v35 = vpop.f32.mrf.mxu1 }
 0x41b   : > { %v1266_v37 = vpop.f32.mrf.mxu1 }
 0x41c   : > { %v1270_v38 = vadd.f32 %v1266_v37, %v1097_v36 }
 0x41d   : > { %v1628_v39 = vpop.f32.mrf.mxu1 }
 0x41e   : > { %1638 = vmatmul.mubr.msk.f32.vlgmr.msra.gmra.mxu0 %vm413_vm1, %v1270_v38 }
 0x4de   : > { %v1351_v40 = vpop.f32.mrf.mxu0 }
 0x4df   : > { %v1352_v41 = vadd.f32 %v1530_v0, %v1351_v40 }
 0x4e0   : > { %v1639_v42 = vpop.f32.mrf.mxu0 }
 0x4e1   : > { %v1355_v25 = vmax.f32 %v1352_v41, 0.0 }
 0x4e3   : > { %v1356_v43 = vadd.f32 %v1355_v25, %v1270_v38 }
 0x4e5   : > { %1357 = vst.msk [vmem:[%s400_s17] sm:$0xff] %vm413_vm1, %v1356_v43 }
 0x4e6   : > { %1891 = shalt.err (!%p1888_p8)
}
 0x4e7   : > { %s1892_s29 = scalar_lea.hbm %s1370_s2, 128  ;;  %s1896_s26 = scalar_lea.hbm %s2337_s8, 256 }
 0x4e8   : > { %p1893_p10 = scmp.ne.s32.totalorder %s1370_s2, %s1892_s29  ;;  %p1897_p2 = scmp.lt.s32.totalorder %s1370_s2, %s2337_s8 }
 0x4e9   : > { %p1898_p4 = scmp.lt.s32.totalorder %s1896_s26, %s1892_s29 }
 0x4ea   : > { %p1894_p1 = pnand %p1893_p10, %p2364_p0 }
 0x4eb   : > { %p1899_p6 = por %p1898_p4, %p1897_p2 }
 0x4ec   : > { %p1895_p11 = pneg %p1894_p1 }
 0x4ee   : > { %p1900_p12 = pnand %p1899_p6, %p1895_p11 }
 0x4f0   : > { %1903 = shalt.err (!%p1900_p12)
}
 0x4f1   : > { %1656 = dma.vmem_to_hbm [thread:$0]  (%p2364_p0), %s1373_s22, 128, %s1370_s2, %s1359_s13  }
 0x4f2 PF: > { %s1384_s4 = sand.u32 1, %s1942_s27   ;;  %p2365_p5 = scmp.ne.s32.totalorder %s2348_s12, 0 }
 0x4f3   : > { %p2366_p3 = scmp.ge.s32.totalorder %s1954_s30, 2  ;;  %s1385_s20 = scalar_lea.sflag [#allocation4], %s1384_s4 }
 0x4f5   : > { %p1676_p7 = pnand %p2366_p3, %p2365_p5 }
 0x4f7   : > { %p1677_p9 = pneg %p1676_p7 }
 0x4f9   : > { %1937 = dma.done.wait (%p1677_p9), %s1385_s20, 128  }
 0x4fa   : > { %1939 = vsyncadd (%p1677_p9), %s1385_s20, 4294967168  ;;  %s2367_s14 = sld [smem:[#allocation17_spill]]  ;;  %p25_p13 = scmp.ge.s32.totalorder %s2093_s18, 4  }
 0x4fb   : > { %s2368_s29 = sld [smem:[#allocation18_spill]]  ;;  %s2369_s27 = smov %s1946_s28 }
 0x4fc   : > { %s2371_s30 = smov %s2093_s18  ;;  %27 = sbr.rel (!%p25_p13) target bundleno = 12 (0xc), region = 122 }
 0x500   : > { %s2370_s28 = smov %s2367_s14 }
 0x501   :  { %1390 = vsyncpa [#allocation3], 1 }
 0x502   :  { %1392 = vsyncpa [#allocation3 + $0x1], 1 }
 0x503   :  { %1393 = vsyncpa [#allocation6], 1 }
 0x504   :  { %1395 = vsyncpa [#allocation6 + $0x1], 1 }
 0x505   :  { %1396 = vsyncpa [#allocation9], 1 }
 0x506   :  { %1397 = vsyncpa [#allocation4], 1 }
 0x507   :  { %1399 = vsyncpa [#allocation4 + $0x1], 1 }

// kernel: tpu_custom_call.1
= control target key start
LH: loop header
LB: loop body
LE: loop exit
PB: predicated region body
PF: predicated region fallthrough
CT: control target
= control target key end

     0   :  { %s2329_s0 = inlined_call_operand.hbm [shape: f32[16,32], index: 0, kind: input, shape index: {}]   ;;  %s2330_s1 = inlined_call_operand.hbm [shape: f32[16,32], index: 1, kind: input, shape index: {}]   ;;  %s2331_s2 = inlined_call_operand.hbm [shape: f32[32,32], index: 2, kind: input, shape index: {}]   ;;  %s2332_s3 = inlined_call_operand.vmem [shape: f32[1,32], index: 3, kind: input, shape index: {}]   ;;  %s2333_s4 = inlined_call_operand.hbm [shape: f32[32,64], index: 4, kind: input, shape index: {}]   ;;  %s2334_s5 = inlined_call_operand.vmem [shape: f32[1,64], index: 5, kind: input, shape index: {}]   ;;  %s2335_s6 = inlined_call_operand.hbm [shape: f32[32,32], index: 6, kind: input, shape index: {}]   ;;  %s2336_s7 = inlined_call_operand.vmem [shape: f32[1,32], index: 7, kind: input, shape index: {}]   ;;  %s2337_s8 = inlined_call_operand.hbm [shape: f32[16,32], index: 8, kind: output, shape index: {}]  }
   0x1   :  { %2343 = sst [smem:[#allocation19_spill]] %s2331_s2 }
   0x2   :  { %2344 = sst [smem:[#allocation20_spill]] %s2333_s4 }
   0x3   :  { %2345 = sst [smem:[#allocation21_spill]] %s2335_s6 }
   0x4   :  { %13 = vsyncpa [#allocation3], 0 }
   0x5   :  { %15 = vsyncpa [#allocation3 + $0x1], 0 }
   0x6   :  { %16 = vsyncpa [#allocation6], 0 }
   0x7   :  { %18 = vsyncpa [#allocation6 + $0x1], 0 }
   0x8   :  { %19 = vsyncpa [#allocation9], 0 }
   0x9   :  { %20 = vsyncpa [#allocation4], 0 }
   0xa   :  { %22 = vsyncpa [#allocation4 + $0x1], 0  ;;  %s2013_s27 = smov 0   ;;  %s2015_s28 = smov 0  }
   0xb   :  { %s2017_s29 = smov 0   ;;  %s2019_s30 = smov 0  }
   0xc LB: > { %2346 = sst [smem:[#allocation17_spill]] %s1950_s29  ;;  %s2034_s9 = sadd.s32 4294967295, %s1954_s30   ;;  %s1954_s30 = sphi %s2019_s30, %s2371_s30   ;;  %s1950_s29 = sphi %s2017_s29, %s2368_s29   ;;  %s1946_s28 = sphi %s2015_s28, %s2370_s28   ;;  %s1942_s27 = sphi %s2013_s27, %s2369_s27  }
   0xd   : > { %s1493_s10 = sadd.s32 4294967294, %s1954_s30   ;;  %p48_p0 = scmp.ne.s32.totalorder %s1946_s28, %s1942_s27 }
   0xe   : > { %p2338_p1 = scmp.eq.s32.totalorder %s2034_s9, 0  ;;  %p230_p3 = scmp.eq.s32.totalorder %s1493_s10, 1 }
   0xf   : > { %p1494_p5 = scmp.ge.s32.totalorder %s1954_s30, 1  ;;  %p237_p7 = scmp.lt.s32.totalorder %s1954_s30, 3 }
  0x10   : > { %p2043_p4 = por %p2338_p1, %p48_p0  ;;  %p2048_p6 = por %p230_p3, %p48_p0 }
  0x11   : > { %p2053_p8 = pnand %p1494_p5, %p237_p7  ;;  %s1956_s14 = smov [#allocation7]  }
  0x12   : > { %s2347_s11 = scalar_select %p2043_p4, 1, 0 }
  0x13   : > { %s2348_s12 = scalar_select %p2048_p6, 1, 0 }
  0x14   : > { %s2349_s13 = scalar_select %p2053_p8, 1, 0 }
  0x15   : > { %s249_s15 = sshll.u32 %s1956_s14, 4  ;;  %p1658_p9 = pneg %p2053_p8  ;;  %s250_s15 = int_to_ptr.vmem [resolvable:$true] %s249_s15 }
  0x16   : > { %s1957_s17 = smov [#allocation8]   ;;  %s1958_s19 = smov [#allocation10]  }
  0x17   : > { %p2062_p11 = pnand %p1658_p9, %p2338_p1  ;;  %s265_s18 = sshll.u32 %s1957_s17, 4  ;;  %s266_s18 = int_to_ptr.vmem [resolvable:$true] %s265_s18 }
  0x18   : > { %s281_s20 = sshll.u32 %s1958_s19, 4  ;;  %s1755_s21 = scalar_lea.vmem %s250_s15, 512  ;;  %s282_s20 = int_to_ptr.vmem [resolvable:$true] %s281_s20 }
  0x19   : > { %p1746_p12 = pneg %p2062_p11  ;;  %p1756_p13 = scmp.ne.s32.totalorder %s250_s15, %s1755_s21 }
  0x1a   : > { %p1763_p5 = scmp.lt.s32.totalorder %s250_s15, %s250_s15  ;;  %p1764_p7 = scmp.lt.s32.totalorder %s1755_s21, %s1755_s21 }
  0x1b   : > { %p1758_p0 = pnand %p1756_p13, %p1746_p12 }
  0x1c   : > { %p1765_p9 = por %p1764_p7, %p1763_p5 }
  0x1d   : > { %p1759_p3 = pneg %p1758_p0 }
  0x1f   : > { %p1766_p10 = pnand %p1765_p9, %p1759_p3 }
  0x21   : > { %1769 = shalt.err (!%p1766_p10)
}
  0x22   : > { %s1959_s22 = smov 128   ;;  %s1960_s23 = smov 8  }
  0x23   : > { %s2351_s2 = sld [smem:[#allocation19_spill]]  ;;  %s1781_s26 = scalar_lea.vmem %s266_s18, 512 }
  0x24   : > { %p1782_p1 = scmp.ne.s32.totalorder %s266_s18, %s1781_s26  ;;  %p1789_p2 = scmp.lt.s32.totalorder %s266_s18, %s266_s18 }
  0x25   : > { %p1790_p6 = scmp.lt.s32.totalorder %s1781_s26, %s1781_s26 }
  0x26   : > { %p1784_p13 = pnand %p1782_p1, %p1746_p12 }
  0x27   : > { %p1791_p5 = por %p1790_p6, %p1789_p2 }
  0x28   : > { %p1785_p0 = pneg %p1784_p13 }
  0x29   : > { %1661 = dma.hbm_to_vmem [thread:$0]  (!%p2062_p11), %s2351_s2, 512, %s250_s15, [#allocation6], %s1959_s22, %s1959_s22, %s1960_s23  }
  0x2a   : > { %p1792_p3 = pnand %p1791_p5, %p1785_p0 }
  0x2c   : > { %1795 = shalt.err (!%p1792_p3)
}
  0x2d   : > { %s2352_s4 = sld [smem:[#allocation20_spill]]  ;;  %s1807_s15 = scalar_lea.vmem %s282_s20, 512 }
  0x2e   : > { %p1808_p10 = scmp.ne.s32.totalorder %s282_s20, %s1807_s15  ;;  %p1815_p9 = scmp.lt.s32.totalorder %s282_s20, %s282_s20 }
  0x2f   : > { %p1816_p13 = scmp.lt.s32.totalorder %s1807_s15, %s1807_s15 }
  0x30   : > { %p1810_p7 = pnand %p1808_p10, %p1746_p12 }
  0x31   : > { %p1817_p4 = por %p1816_p13, %p1815_p9 }
  0x32   : > { %p1811_p1 = pneg %p1810_p7 }
  0x33   : > { %1664 = dma.hbm_to_vmem [thread:$0]  (!%p2062_p11), %s2352_s4, 512, %s266_s18, [#allocation9], %s1959_s22, %s1959_s22, %s1960_s23  }
  0x34   : > { %p1818_p2 = pnand %p1817_p4, %p1811_p1 }
  0x36   : > { %1821 = shalt.err (!%p1818_p2)
}
  0x37   : > { %s2353_s6 = sld [smem:[#allocation21_spill]]  ;;  %s2093_s18 = sadd.s32 1, %s1954_s30  }
  0x38   : > { %s32_s21 = ssub.s32 %s1954_s30, %s2093_s18  ;;  %s35_s16 = sadd.s32 1, %s1950_s29 }
  0x39   : > { %p33_p4 = scmp.eq.s32.totalorder %s32_s21, 0  ;;  %p42_p6 = scmp.ne.s32.totalorder %s1950_s29, %s1946_s28 }
  0x3a   : > { %p43_p12 = scmp.eq.s32.totalorder %s1954_s30, 0  ;;  %p1682_p0 = scmp.lt.s32.totalorder %s1954_s30, 2 }
  0x3b   : > { %s2103_s24 = scalar_select %p33_p4, %s1950_s29, %s35_s16  }
  0x3c   : > { %p44_p5 = por %p43_p12, %p42_p6  ;;  %p2355_p3 = scmp.eq.s32.totalorder %s2034_s9, 1 }
  0x3d   : > { %1667 = dma.hbm_to_vmem [thread:$0]  (!%p2062_p11), %s2353_s6, 512, %s282_s20, [#allocation9], %s1959_s22, %s1959_s22, %s1960_s23  }
  0x3e   : > { %2354 = sst [smem:[#allocation18_spill]] %s2103_s24  ;;  %p2107_p10 = por %p2355_p3, %p42_p6 }
  0x3f   : > { %s298_s26 = sand.u32 1, %s1950_s29   ;;  %s1500_s10 = sshll.u32 %s1954_s30, 7 }
  0x40   : > { %s2356_s25 = scalar_select %p2107_p10, 1, 0 }
  0x41   : > { %s2113_s20 = sshll.u32 %s298_s26, 3  ;;  %s2118_s14 = scalar_lea.hbm %s2329_s0, %s1500_s10 }
  0x42   : > { %s302_s15 = scalar_lea.vmem [#allocation2], %s2113_s20  ;;  %p2121_p11 = pnand %p1682_p0, %p44_p5 }
  0x43   : > { %s309_s17 = sshll.u32 %s302_s15, 4  ;;  %s2128_s2 = scalar_lea.hbm %s2330_s1, %s1500_s10  ;;  %s310_s17 = int_to_ptr.vmem [resolvable:$true] %s309_s17 }
  0x44   : > { %s299_s22 = scalar_lea.sflag [#allocation3], %s298_s26  ;;  %s1822_s23 = scalar_lea.hbm %s2118_s14, 128 }
  0x45   : > { %p1823_p7 = scmp.ne.s32.totalorder %s2118_s14, %s1822_s23  ;;  %p1824_p1 = pneg %p2121_p11 }
  0x46   : > { %s1827_s6 = scalar_lea.hbm %s2329_s0, 256  ;;  %p1828_p2 = scmp.lt.s32.totalorder %s2118_s14, %s2329_s0 }
  0x47   : > { %p1825_p9 = pnand %p1824_p1, %p1823_p7  ;;  %p1829_p4 = scmp.lt.s32.totalorder %s1827_s6, %s1822_s23 }
  0x49   : > { %p1826_p13 = pneg %p1825_p9  ;;  %p1830_p6 = por %p1829_p4, %p1828_p2 }
  0x4b   : > { %p1831_p12 = pnand %p1830_p6, %p1826_p13 }
  0x4d   : > { %1834 = shalt.err (!%p1831_p12)
}
  0x4e   : > { %s1835_s26 = scalar_lea.vmem %s310_s17, 128  ;;  %s1961_s10 = smov [#allocation2]  }
  0x4f   : > { %p1836_p0 = scmp.ne.s32.totalorder %s310_s17, %s1835_s26  ;;  %s1840_s21 = sshll.u32 %s1961_s10, 4  ;;  %s1841_s21 = int_to_ptr.vmem [resolvable:$false] %s1840_s21 }
  0x50   : > { %s1842_s4 = scalar_lea.vmem %s1841_s21, 256  ;;  %p1843_p7 = scmp.lt.s32.totalorder %s310_s17, %s1841_s21 }
  0x51   : > { %p1838_p5 = pnand %p1836_p0, %p1824_p1  ;;  %p1844_p9 = scmp.lt.s32.totalorder %s1842_s4, %s1835_s26 }
  0x53   : > { %p1839_p3 = pneg %p1838_p5  ;;  %p1845_p10 = por %p1844_p9, %p1843_p7 }
  0x55   : > { %p1846_p8 = pnand %p1845_p10, %p1839_p3 }
  0x57   : > { %1849 = shalt.err (!%p1846_p8)
}
  0x58   : > { %1671 = dma.hbm_to_vmem [thread:$0]  (!%p2121_p11), %s2118_s14, 128, %s310_s17, %s299_s22  }
  0x59   : > { %s316_s6 = sand.u32 1, %s1954_s30   ;;  %s320_s29 = scalar_lea.vmem [#allocation5], %s2113_s20 }
  0x5a   : > { %s327_s24 = sshll.u32 %s320_s29, 4  ;;  %s317_s16 = scalar_lea.sflag [#allocation6], %s316_s6  ;;  %s328_s24 = int_to_ptr.vmem [resolvable:$true] %s327_s24 }
  0x5b   : > { %s1850_s23 = scalar_lea.hbm %s2128_s2, 128  ;;  %s1855_s10 = scalar_lea.hbm %s2330_s1, 256 }
  0x5c   : > { %p1851_p13 = scmp.ne.s32.totalorder %s2128_s2, %s1850_s23  ;;  %p1856_p2 = scmp.lt.s32.totalorder %s2128_s2, %s2330_s1 }
  0x5d   : > { %p1857_p4 = scmp.lt.s32.totalorder %s1855_s10, %s1850_s23 }
  0x5e   : > { %p1853_p8 = pnand %p1851_p13, %p1824_p1 }
  0x5f   : > { %p1858_p6 = por %p1857_p4, %p1856_p2 }
  0x60   : > { %p1854_p10 = pneg %p1853_p8 }
  0x62   : > { %p1859_p12 = pnand %p1858_p6, %p1854_p10 }
  0x64   : > { %1862 = shalt.err (!%p1859_p12)
}
  0x65   : > { %s1863_s20 = scalar_lea.vmem %s328_s24, 128  ;;  %s1962_s14 = smov [#allocation5]  }
  0x66   : > { %p1864_p0 = scmp.ne.s32.totalorder %s328_s24, %s1863_s20  ;;  %s1868_s17 = sshll.u32 %s1962_s14, 4  ;;  %s1869_s17 = int_to_ptr.vmem [resolvable:$false] %s1868_s17 }
  0x67   : > { %s1870_s22 = scalar_lea.vmem %s1869_s17, 256  ;;  %p1871_p7 = scmp.lt.s32.totalorder %s328_s24, %s1869_s17 }
  0x68   : > { %p1866_p5 = pnand %p1864_p0, %p1824_p1  ;;  %p1872_p9 = scmp.lt.s32.totalorder %s1870_s22, %s1863_s20 }
  0x6a   : > { %p1867_p3 = pneg %p1866_p5  ;;  %p1873_p13 = por %p1872_p9, %p1871_p7 }
  0x6c   : > { %p1874_p8 = pnand %p1873_p13, %p1867_p3 }
  0x6e   : > { %1877 = shalt.err (!%p1874_p8)
}
  0x6f   : > { %1674 = dma.hbm_to_vmem [thread:$0]  (!%p2121_p11), %s2128_s2, 128, %s328_s24, %s317_s16  }
  0x70   : > { %p2358_p10 = scmp.ne.s32.totalorder %s2349_s13, 0 }
  0x71   : > { %s2173_s6 = sand.u32 (!%p2358_p10), 1, %s1946_s28   ;;  %p2359_p1 = scmp.ne.s32.totalorder (!%p2358_p10), %s2347_s11, 0 }
  0x72   : > { %336 = sbr.rel (%p2358_p10) target bundleno = 1266 (0x4f2), region = 52  ;;  %s2176_s29 = sshll.u32 (!%p2358_p10), %s2173_s6, 3 }
  0x73   : > { %s339_s23 = scalar_lea.sflag (!%p2358_p10), [#allocation3], %s2173_s6  ;;  %s342_s15 = scalar_lea.vmem (!%p2358_p10), [#allocation2], %s2176_s29 }
  0x77   : > { %1921 = dma.done.wait (%p2359_p1), %s339_s23, 128  }
  0x78   : > { %1923 = vsyncadd (%p2359_p1), %s339_s23, 4294967168  ;;  %s347_s2 = sand.u32 1, %s2034_s9   ;;  %s351_s19 = scalar_lea.vmem [#allocation5], %s2176_s29 }
  0x79   : > { %s348_s13 = scalar_lea.sflag [#allocation6], %s347_s2 }
  0x7a   : > { %1925 = dma.done.wait (%p2359_p1), %s348_s13, 128  }
  0x7b   : > { %1927 = vsyncadd (%p2359_p1), %s348_s13, 4294967168  ;;  %p2360_p11 = scmp.eq.s32.totalorder %s2034_s9, 0 }
  0x7d   : > { %1929 = dma.done.wait (%p2360_p11), [#allocation6], 512   ;;  %p2361_p2 = pmov %p2360_p11 }
  0x7f   : > { %1931 = vsyncadd (%p2361_p2), [#allocation6], 4294966784  ;;  %p2362_p4 = pmov %p2361_p2 }
  0x80   : > { %p2363_p6 = pmov %p2361_p2 }
  0x81   : > { %1933 = dma.done.wait (%p2362_p4), [#allocation9], 1024  }
  0x82   : > { %1935 = vsyncadd (%p2363_p6), [#allocation9], 4294966272  ;;  %v1963_v0 = vmov 0.0   ;;  %vm1964_vm0 = vmmov 0   ;;  %v491_v1 = vld [vmem:[#allocation8 + $0x18] sm:$0xff]  ;;  %v490_v2 = vld [vmem:[#allocation8 + $0x10] sm:$0xff]  ;;  %v573_v11 = vlaneseq }
  0x83   : > { %1578 = vmatprep.subr.mxu1 %v1963_v0  ;;  %1567 = vmatprep.subr.mxu0 %v1963_v0  ;;  %v405_v3 = vld [vmem:[#allocation7 + $0x18] sm:$0xff]  ;;  %v489_v4 = vld [vmem:[#allocation8 + $0x8] sm:$0xff]  ;;  %v404_v5 = vld [vmem:[#allocation7 + $0x10] sm:$0xff]  ;;  %vm413_vm1 = vcmask 261120   ;;  %vm657_vm12 = vcmask 64512   ;;  %s1965_s10 = smov 32  }
  0x84   : > { %1586 = vmatprep.mubr.msk.f32.mxu1 %vm1964_vm0, %v1963_v0  ;;  %1575 = vmatprep.mubr.msk.f32.mxu0 %vm1964_vm0, %v1963_v0  ;;  %v403_v6 = vld [vmem:[#allocation7 + $0x8] sm:$0xff]  ;;  %v488_v7 = vld [vmem:[#allocation8] sm:$0xff]  ;;  %v487_v8 = vld [vmem:[%s351_s19] sm:$0xff]  ;;  %v574_v12 = vand.u32 127, %v573_v11  ;;  %s1966_s21 = smov 96   ;;  %s1533_s14 = sshll.u32 %s2034_s9, 7 }
  0x85   : > { %1579 = vmatpush3.msra.mxu1 %v491_v1  ;;  %1568 = vmatpush3.msra.mxu0 %v405_v3  ;;  %v402_v9 = vld [vmem:[#allocation7] sm:$0xff]  ;;  %s400_s17 = scalar_lea.vmem [#allocation11], %s2176_s29  ;;  %s1370_s2 = scalar_lea.hbm %s2337_s8, %s1533_s14 }
  0x86   : > { %1580 = vmatprep.subr.mxu1 %v1963_v0  ;;  %1569 = vmatprep.subr.mxu0 %v1963_v0  ;;  %v401_v10 = vld [vmem:[%s342_s15] sm:$0xff]  ;;  %vm752_vm2 = vcmp.ge.s32.totalorder %v574_v12, 8  ;;  %vm753_vm3 = vcmp.lt.s32.totalorder %v574_v12, 16  ;;  %vm576_vm4 = vcmp.lt.s32.totalorder %v574_v12, 8  ;;  %vm925_vm6 = vcmp.ge.s32.totalorder %v574_v12, 16  ;;  %s1372_s22 = sshll.u32 %s400_s17, 4  ;;  %s1373_s22 = int_to_ptr.vmem [resolvable:$true] %s1372_s22 }
  0x87   : > { %1581 = vmatpush3.msra.mxu1 %v490_v2  ;;  %1570 = vmatpush3.msra.mxu0 %v404_v5  ;;  %v1512_v13 = vld [vmem:[%s2334_s5] ss:$0 sm:$0xff]  ;;  %vm754_vm5 = vmand %vm752_vm2, %vm753_vm3  ;;  %vm926_vm7 = vcmp.lt.s32.totalorder %v574_v12, 24  ;;  %v1514_v18 = vsel %vm576_vm4, 1.0, %v1963_v0  ;;  %vm1098_vm9 = vcmp.ge.s32.totalorder %v574_v12, 24  ;;  %vm1099_vm10 = vcmp.lt.s32.totalorder %v574_v12, 32 }
  0x88   : > { %1582 = vmatprep.subr.mxu1 %v1963_v0  ;;  %1571 = vmatprep.subr.mxu0 %v1963_v0  ;;  %v1518_v19 = vsel %vm754_vm5, 1.0, %v1963_v0  ;;  %v1510_v21 = vld [vmem:[%s2332_s3] ss:$0 sm:$0xff]  ;;  %vm927_vm8 = vmand %vm925_vm6, %vm926_vm7  ;;  %s1359_s13 = scalar_lea.sflag [#allocation4], %s2173_s6  ;;  %s1878_s19 = scalar_lea.vmem %s1373_s22, 128 }
  0x89   : > { %1583 = vmatpush3.msra.mxu1 %v489_v4  ;;  %1572 = vmatpush3.msra.mxu0 %v403_v6  ;;  %v1522_v26 = vsel %vm927_vm8, 1.0, %v1963_v0  ;;  %vm1100_vm11 = vmand %vm1098_vm9, %vm1099_vm10  ;;  %p1879_p12 = scmp.ne.s32.totalorder %s1373_s22, %s1878_s19  ;;  %p2364_p0 = scmp.ne.s32.totalorder %s2356_s25, 0 }
  0x8a   : > { %1584 = vmatprep.subr.mxu1 %v1963_v0  ;;  %1573 = vmatprep.subr.mxu0 %v1963_v0  ;;  %v1526_v28 = vsel %vm1100_vm11, 1.0, %v1963_v0  ;;  %s1967_s11 = smov [#allocation11]  }
  0x8b   : > { %1585 = vmatpush3.msra.mxu1 %v488_v7  ;;  %1574 = vmatpush3.msra.mxu0 %v402_v9  ;;  %p1880_p5 = pnand %p1879_p12, %p2364_p0  ;;  %s1882_s24 = sshll.u32 %s1967_s11, 4  ;;  %s1883_s24 = int_to_ptr.vmem [resolvable:$false] %s1882_s24 }
  0x8c   : > { %1587 = vmatmul.mubr.msk.f32.vlgmr.msra.gmra.mxu1 %vm413_vm1, %v487_v8  ;;  %1576 = vmatmul.mubr.msk.f32.vlgmr.msra.gmra.mxu0 %vm413_vm1, %v401_v10  ;;  %s1884_s9 = scalar_lea.vmem %s1883_s24, 256  ;;  %p1885_p7 = scmp.lt.s32.totalorder %s1373_s22, %s1883_s24 }
  0x8d   : > { %1589 = vmatprep.subr.mxu1 %v1963_v0  ;;  %1599 = vmatprep.subr.mxu0 %v1963_v0  ;;  %p1881_p3 = pneg %p1880_p5  ;;  %p1886_p9 = scmp.lt.s32.totalorder %s1884_s9, %s1878_s19 }
  0x8e   : > { %1591 = vmatprep.mubr.msk.f32.mxu1 %vm1964_vm0, %v1963_v0  ;;  %1601 = vmatprep.mubr.msk.f32.mxu0 %vm1964_vm0, %v1963_v0 }
  0x8f   : > { %p1887_p13 = por %p1886_p9, %p1885_p7 }
  0x91   : > { %p1888_p8 = pnand %p1887_p13, %p1881_p3 }
 0x14c   : > { %v568_v14 = vpop.f32.mrf.mxu1  ;;  %v483_v16 = vpop.f32.mrf.mxu0 }
 0x14d   : > { %v2223_v15 = vadd.f32 %v1512_v13, %v568_v14  ;;  %v2231_v25 = vadd.f32 %v1510_v21, %v483_v16 }
 0x14e   : > { %v1588_v17 = vpop.f32.mrf.mxu1  ;;  %v1577_v22 = vpop.f32.mrf.mxu0 }
 0x14f   : > { %v572_v20 = vmul.f32 0.17677669, %v2223_v15 }
 0x151   : > { %v580_v23 = vmul.f32 %v1514_v18, %v572_v20  ;;  %v757_v24 = vmul.f32 %v1518_v19, %v572_v20  ;;  %v930_v27 = vmul.f32 %v1522_v26, %v572_v20  ;;  %v1103_v29 = vmul.f32 %v1526_v28, %v572_v20 }
 0x153   : > { %1590 = vmatpush3.xpose.msk.msra.mxu1 %vm413_vm1, %v580_v23  ;;  %1600 = vmatpush3.xpose.msk.msra.mxu0 %vm413_vm1, %v757_v24  ;;  %v1274_v23 = vld [vmem:[#allocation10 + $0x18] sm:$0xff]  ;;  %v1273_v24 = vld [vmem:[#allocation10 + $0x10] sm:$0xff] }
 0x154   : > { %1609 = vmatprep.subr.mxu0 %v1963_v0  ;;  %1594 = vmatprep.subr.mxu1 %v1963_v0 }
 0x156   : > { %1592 = vmatmul.mubr.msk.f32.vlgmr.msra.gmra.mxu1 %vm413_vm1, %v2231_v25  ;;  %1602 = vmatmul.mubr.msk.f32.vlgmr.msra.gmra.mxu0 %vm413_vm1, %v2231_v25 }
 0x157   : > { %1610 = vmatpush3.xpose.msk.msra.mxu0 %vm413_vm1, %v930_v27  ;;  %1611 = vmatprep.mubr.msk.f32.mxu0 %vm1964_vm0, %v1963_v0  ;;  %v1271_v27 = vld [vmem:[#allocation10] sm:$0xff] }
 0x158   : > { %1619 = vmatprep.subr.mxu0 %v1963_v0  ;;  %1596 = vmatprep.mubr.msk.f32.mxu1 %vm1964_vm0, %v1963_v0 }
 0x15a   : > { %1612 = vmatmul.mubr.msk.f32.vlgmr.msra.gmra.mxu0 %vm413_vm1, %v2231_v25 }
 0x15b   : > { %1620 = vmatpush3.xpose.msk.msra.mxu0 %vm413_vm1, %v1103_v29  ;;  %1621 = vmatprep.mubr.msk.f32.mxu0 %vm1964_vm0, %v1963_v0 }
 0x15c   : > { %1629 = vmatprep.subr.mxu0 %v1963_v0 }
 0x15e   : > { %1622 = vmatmul.mubr.msk.f32.vlgmr.msra.gmra.mxu0 %vm413_vm1, %v2231_v25 }
 0x15f   : > { %1637 = vmatprep.mubr.msk.f32.mxu0 %vm1964_vm0, %v1963_v0  ;;  %1630 = vmatpush3.msra.mxu0 %v1274_v23 }
 0x160   : > { %1631 = vmatprep.subr.mxu0 %v1963_v0 }
 0x161   : > { %1632 = vmatpush3.msra.mxu0 %v1273_v24 }
 0x162   : > { %1633 = vmatprep.subr.mxu0 %v1963_v0 }
 0x216   : > { %v653_v30 = vpop.f32.mrf.mxu1  ;;  %v827_v31 = vpop.f32.mrf.mxu0 }
 0x217   : > { %v658_v32 = vsel %vm657_vm12, %v653_v30, -inf  ;;  %v831_v36 = vsel %vm657_vm12, %v827_v31, -inf }
 0x218   : > { %659 = vmax.xlane.f32.xlu0 %v658_v32  ;;  %v1593_v33 = vpop.f32.mrf.mxu1  ;;  %v1603_v34 = vpop.f32.mrf.mxu0 }
 0x21a   : > { %v1000_v35 = vpop.f32.mrf.mxu0 }
 0x21b   : > { %v1004_v37 = vsel %vm657_vm12, %v1000_v35, -inf }
 0x21c   : > { %832 = vmax.xlane.f32.xlu0 %v831_v36  ;;  %1005 = vmax.xlane.f32.xlu1 %v1004_v37  ;;  %v1613_v38 = vpop.f32.mrf.mxu0 }
 0x21e   : > { %v1173_v39 = vpop.f32.mrf.mxu0 }
 0x21f   : > { %v1177_v40 = vsel %vm657_vm12, %v1173_v39, -inf }
 0x220   : > { %1178 = vmax.xlane.f32.xlu1 %v1177_v40  ;;  %v1623_v41 = vpop.f32.mrf.mxu0 }
 0x231   : > { %843 = vrot.lane.b32.xlu1 %v1518_v19, %s1965_s10 }
 0x232   : > { %670 = vrot.lane.b32.xlu0 %v1514_v18, %s1965_s10 }
 0x235   : > { %1016 = vrot.lane.b32.xlu1 %v1522_v26, %s1965_s10  ;;  %v1272_v26 = vld [vmem:[#allocation10 + $0x8] sm:$0xff] }
 0x236   : > { %1634 = vmatpush3.msra.mxu0 %v1272_v26 }
 0x237   : > { %1635 = vmatprep.subr.mxu0 %v1963_v0 }
 0x238   : > { %1636 = vmatpush3.msra.mxu0 %v1271_v27 }
 0x239   : > { %1189 = vrot.lane.b32.xlu1 %v1526_v28, %s1965_s10 }
 0x2a1   : > { %v660_v42 = vpop.xlane.xlu0 %659 }
 0x2a2   : > { %v661_v43 = vsub.f32 %v653_v30, %v660_v42 }
 0x2a4   : > { %v662_v44 = vmul.f32 1.442695, %v661_v43 }
 0x2a5   : > { %v833_v45 = vpop.xlane.xlu0 %832  ;;  %v1006_v46 = vpop.xlane.xlu1 %1005 }
 0x2a6   : > { %1728 = vpow2.f32 %v662_v44  ;;  %v834_v47 = vsub.f32 %v827_v31, %v833_v45  ;;  %v1007_v48 = vsub.f32 %v1000_v35, %v1006_v46 }
 0x2a8   : > { %v835_v49 = vmul.f32 1.442695, %v834_v47  ;;  %v1008_v50 = vmul.f32 1.442695, %v1007_v48 }
 0x2a9   : > { %v1179_v51 = vpop.xlane.xlu1 %1178  ;;  %v671_v4 = vpop.permute.xlu0 %670 }
 0x2aa   : > { %1730 = vpow2.f32 %v835_v49  ;;  %v1180_v52 = vsub.f32 %v1173_v39, %v1179_v51  ;;  %v673_v6 = vmul.f32 %v671_v4, %v2223_v15 }
 0x2ab   : > { %1732 = vpow2.f32 %v1008_v50 }
 0x2ac   : > { %v1181_v53 = vmul.f32 1.442695, %v1180_v52 }
 0x2ad   : > { %v844_v62 = vpop.permute.xlu1 %843 }
 0x2ae   : > { %1734 = vpow2.f32 %v1181_v53  ;;  %v846_v1 = vmul.f32 %v844_v62, %v2223_v15 }
 0x2b1   : > { %v1017_v63 = vpop.permute.xlu1 %1016 }
 0x2b2   : > { %v1019_v2 = vmul.f32 %v1017_v63, %v2223_v15 }
 0x2b3   : > { %v1729_v54 = vpop.eup %1728 }
 0x2b4   : > { %v664_v55 = vsel %vm657_vm12, %v1729_v54, 0.0 }
 0x2b5   : > { %665 = vadd.xlane.f32.xlu0 %v664_v55  ;;  %v1190_v3 = vpop.permute.xlu1 %1189 }
 0x2b6   : > { %v1192_v5 = vmul.f32 %v1190_v3, %v2223_v15 }
 0x2b7   : > { %v1731_v56 = vpop.eup %1730 }
 0x2b8   : > { %v1733_v57 = vpop.eup %1732  ;;  %v837_v58 = vsel %vm657_vm12, %v1731_v56, 0.0 }
 0x2b9   : > { %v1010_v59 = vsel %vm657_vm12, %v1733_v57, 0.0  ;;  %838 = vadd.xlane.f32.xlu1 %v837_v58 }
 0x2ba   : > { %1011 = vadd.xlane.f32.xlu0 %v1010_v59 }
 0x2bb   : > { %v1735_v60 = vpop.eup %1734 }
 0x2bc   : > { %v1183_v61 = vsel %vm657_vm12, %v1735_v60, 0.0 }
 0x2be   : > { %1184 = vadd.xlane.f32.xlu0 %v1183_v61 }
 0x2ca   : > { %848 = vrot.lane.b32.xlu1 %v846_v1, %s1966_s21 }
 0x2ce   : > { %1021 = vrot.lane.b32.xlu1 %v1019_v2, %s1966_s21 }
 0x2d2   : > { %1194 = vrot.lane.b32.xlu1 %v1192_v5, %s1966_s21 }
 0x2d4   : > { %675 = vrot.lane.b32.xlu0 %v673_v6, %s1966_s21 }
 0x33e   : > { %v666_v7 = vpop.xlane.xlu0 %665 }
 0x33f   : > { %1736 = vrcp.f32 %v666_v7 }
 0x342   : > { %v839_v8 = vpop.xlane.xlu1 %838 }
 0x343   : > { %v1012_v9 = vpop.xlane.xlu0 %1011  ;;  %1738 = vrcp.f32 %v839_v8 }
 0x344   : > { %1740 = vrcp.f32 %v1012_v9 }
 0x346   : > { %v849_v11 = vpop.permute.xlu1 %848 }
 0x347   : > { %v1185_v10 = vpop.xlane.xlu0 %1184 }
 0x348   : > { %1742 = vrcp.f32 %v1185_v10 }
 0x34a   : > { %v1022_v16 = vpop.permute.xlu1 %1021 }
 0x34b   : > { %v676_v12 = vpop.permute.xlu0 %675 }
 0x34c   : > { %v1737_v13 = vpop.eup %1736  ;;  %1595 = vmatpush3.msra.mxu1 %v676_v12 }
 0x34d   : > { %1604 = vmatprep.subr.mxu1 %v1963_v0  ;;  %v668_v14 = vmul.f32 %v1737_v13, %v1729_v54 }
 0x34e   : > { %v1195_v21 = vpop.permute.xlu1 %1194 }
 0x34f   : > { %1597 = vmatmul.mubr.msk.f32.vlgmr.msra.gmra.mxu1 %vm657_vm12, %v668_v14 }
 0x350   : > { %v1739_v15 = vpop.eup %1738  ;;  %1605 = vmatpush3.msra.mxu1 %v849_v11  ;;  %1606 = vmatprep.mubr.msk.f32.mxu1 %vm1964_vm0, %v1963_v0 }
 0x351   : > { %1614 = vmatprep.subr.mxu1 %v1963_v0  ;;  %v841_v17 = vmul.f32 %v1739_v15, %v1731_v56  ;;  %v1741_v18 = vpop.eup %1740 }
 0x352   : > { %v1014_v19 = vmul.f32 %v1741_v18, %v1733_v57 }
 0x353   : > { %1607 = vmatmul.mubr.msk.f32.vlgmr.msra.gmra.mxu1 %vm657_vm12, %v841_v17 }
 0x354   : > { %1615 = vmatpush3.msra.mxu1 %v1022_v16  ;;  %1616 = vmatprep.mubr.msk.f32.mxu1 %vm1964_vm0, %v1963_v0 }
 0x355   : > { %1624 = vmatprep.subr.mxu1 %v1963_v0  ;;  %v1743_v20 = vpop.eup %1742 }
 0x356   : > { %v1187_v22 = vmul.f32 %v1743_v20, %v1735_v60 }
 0x357   : > { %1617 = vmatmul.mubr.msk.f32.vlgmr.msra.gmra.mxu1 %vm657_vm12, %v1014_v19 }
 0x358   : > { %1625 = vmatpush3.msra.mxu1 %v1195_v21  ;;  %1626 = vmatprep.mubr.msk.f32.mxu1 %vm1964_vm0, %v1963_v0  ;;  %v1530_v0 = vld [vmem:[%s2336_s7] ss:$0 sm:$0xff] }
 0x35b   : > { %1627 = vmatmul.mubr.msk.f32.vlgmr.msra.gmra.mxu1 %vm657_vm12, %v1187_v22 }
 0x40f   : > { %v747_v28 = vpop.f32.mrf.mxu1 }
 0x410   : > { %v751_v32 = vadd.f32 %v747_v28, %v2231_v25 }
 0x411   : > { %v1598_v29 = vpop.f32.mrf.mxu1 }
 0x413   : > { %v920_v30 = vpop.f32.mrf.mxu1 }
 0x414   : > { %v924_v34 = vadd.f32 %v920_v30, %v751_v32 }
 0x415   : > { %v1608_v31 = vpop.f32.mrf.mxu1 }
 0x417   : > { %v1093_v33 = vpop.f32.mrf.mxu1 }
 0x418   : > { %v1097_v36 = vadd.f32 %v1093_v33, %v924_v34 }
 0x419   : > { %v1618_v35 = vpop.f32.mrf.mxu1 }
 0x41b   : > { %v1266_v37 = vpop.f32.mrf.mxu1 }
 0x41c   : > { %v1270_v38 = vadd.f32 %v1266_v37, %v1097_v36 }
 0x41d   : > { %v1628_v39 = vpop.f32.mrf.mxu1 }
 0x41e   : > { %1638 = vmatmul.mubr.msk.f32.vlgmr.msra.gmra.mxu0 %vm413_vm1, %v1270_v38 }
 0x4de   : > { %v1351_v40 = vpop.f32.mrf.mxu0 }
 0x4df   : > { %v1352_v41 = vadd.f32 %v1530_v0, %v1351_v40 }
 0x4e0   : > { %v1639_v42 = vpop.f32.mrf.mxu0 }
 0x4e1   : > { %v1355_v25 = vmax.f32 %v1352_v41, 0.0 }
 0x4e3   : > { %v1356_v43 = vadd.f32 %v1355_v25, %v1270_v38 }
 0x4e5   : > { %1357 = vst.msk [vmem:[%s400_s17] sm:$0xff] %vm413_vm1, %v1356_v43 }
 0x4e6   : > { %1891 = shalt.err (!%p1888_p8)
}
 0x4e7   : > { %s1892_s29 = scalar_lea.hbm %s1370_s2, 128  ;;  %s1896_s26 = scalar_lea.hbm %s2337_s8, 256 }
 0x4e8   : > { %p1893_p10 = scmp.ne.s32.totalorder %s1370_s2, %s1892_s29  ;;  %p1897_p2 = scmp.lt.s32.totalorder %s1370_s2, %s2337_s8 }
 0x4e9   : > { %p1898_p4 = scmp.lt.s32.totalorder %s1896_s26, %s1892_s29 }
 0x4ea   : > { %p1894_p1 = pnand %p1893_p10, %p2364_p0 }
 0x4eb   : > { %p1899_p6 = por %p1898_p4, %p1897_p2 }
 0x4ec   : > { %p1895_p11 = pneg %p1894_p1 }
 0x4ee   : > { %p1900_p12 = pnand %p1899_p6, %p1895_p11 }
 0x4f0   : > { %1903 = shalt.err (!%p1900_p12)
}
 0x4f1   : > { %1656 = dma.vmem_to_hbm [thread:$0]  (%p2364_p0), %s1373_s22, 128, %s1370_s2, %s1359_s13  }
 0x4f2 PF: > { %s1384_s4 = sand.u32 1, %s1942_s27   ;;  %p2365_p5 = scmp.ne.s32.totalorder %s2348_s12, 0 }
 0x4f3   : > { %p2366_p3 = scmp.ge.s32.totalorder %s1954_s30, 2  ;;  %s1385_s20 = scalar_lea.sflag [#allocation4], %s1384_s4 }
 0x4f5   : > { %p1676_p7 = pnand %p2366_p3, %p2365_p5 }
 0x4f7   : > { %p1677_p9 = pneg %p1676_p7 }
 0x4f9   : > { %1937 = dma.done.wait (%p1677_p9), %s1385_s20, 128  }
 0x4fa   : > { %1939 = vsyncadd (%p1677_p9), %s1385_s20, 4294967168  ;;  %s2367_s14 = sld [smem:[#allocation17_spill]]  ;;  %p25_p13 = scmp.ge.s32.totalorder %s2093_s18, 4  }
 0x4fb   : > { %s2368_s29 = sld [smem:[#allocation18_spill]]  ;;  %s2369_s27 = smov %s1946_s28 }
 0x4fc   : > { %s2371_s30 = smov %s2093_s18  ;;  %27 = sbr.rel (!%p25_p13) target bundleno = 12 (0xc), region = 122 }
 0x500   : > { %s2370_s28 = smov %s2367_s14 }
 0x501   :  { %1390 = vsyncpa [#allocation3], 1 }
 0x502   :  { %1392 = vsyncpa [#allocation3 + $0x1], 1 }
 0x503   :  { %1393 = vsyncpa [#allocation6], 1 }
 0x504   :  { %1395 = vsyncpa [#allocation6 + $0x1], 1 }
 0x505   :  { %1396 = vsyncpa [#allocation9], 1 }
 0x506   :  { %1397 = vsyncpa [#allocation4], 1 }
 0x507   :  { %1399 = vsyncpa [#allocation4 + $0x1], 1 }

</bundles_post_ra>
